<compile_context>
chip_gen: v6e
topology: v6e:2x2x1
jax: 0.10.0
libtpu: 0.0.40
codegen_flags: <defaults>
</compile_context>

<pallas_src>
import jax
import jax.numpy as jnp
from jax.experimental import pallas as pl
from jax.experimental.pallas import tpu as pltpu

STATE_DIM = 10
DISCRETE_ACTION_DIM = 5000
CONTINUOUS_ACTION_DIM = 9
H1, H2 = 64, 32


def _round_up(n, m):
    return (n + m - 1) // m * m


DISC_PAD = _round_up(DISCRETE_ACTION_DIM, 128)   # 5120
CONT_PAD = 128                                   # fused [mean | log_std | zero-pad]


def sac_actor_kernel(x_ref, w1_ref, b1_ref, w2_ref, b2_ref,
                     wd_ref, bd_ref, wc_ref, bc_ref,
                     probs_ref, cont_ref):
    x = x_ref[...]

    # fc1 + relu
    h1 = jnp.dot(x, w1_ref[...], preferred_element_type=jnp.float32) + b1_ref[...]
    h1 = jnp.maximum(h1, 0.0)

    # fc2 + relu
    h2 = jnp.dot(h1, w2_ref[...], preferred_element_type=jnp.float32) + b2_ref[...]
    h2 = jnp.maximum(h2, 0.0)

    # Discrete head: bf16 weight (halves the dominant 640 KiB weight DMA),
    # f32 accumulation + f32 bias. Padded columns carry bias=-1e30 -> prob 0.
    logits = jnp.dot(h2.astype(jnp.bfloat16), wd_ref[...],
                     preferred_element_type=jnp.float32) + bd_ref[...]
    m = jnp.max(logits, axis=-1, keepdims=True)
    e = jnp.exp(logits - m)
    inv = pl.reciprocal(jnp.sum(e, axis=-1, keepdims=True), approx=True)  # EUP slot
    probs_ref[...] = e * inv

    # Fused continuous heads: lanes [0,9)=mean, [9,18)=log_std, rest zero pad.
    cont = jnp.dot(h2, wc_ref[...], preferred_element_type=jnp.float32) + bc_ref[...]
    lane = jax.lax.broadcasted_iota(jnp.int32, cont.shape, 1)
    is_log_std = (lane >= CONTINUOUS_ACTION_DIM) & (lane < 2 * CONTINUOUS_ACTION_DIM)
    cont_ref[...] = jnp.where(is_log_std, jnp.clip(cont, -20.0, 2.0), cont)


def init_params(key):
    """Deterministic init mimicking nn.Linear's U(-1/sqrt(fan_in), 1/sqrt(fan_in))."""
    def linear(k, fan_in, fan_out):
        kw, kb = jax.random.split(k)
        bound = 1.0 / jnp.sqrt(fan_in)
        w = jax.random.uniform(kw, (fan_in, fan_out), jnp.float32, -bound, bound)
        b = jax.random.uniform(kb, (1, fan_out), jnp.float32, -bound, bound)
        return w, b

    k1, k2, kd, km, ks = jax.random.split(key, 5)
    w1, b1 = linear(k1, STATE_DIM, H1)
    w2, b2 = linear(k2, H1, H2)
    wd, bd = linear(kd, H2, DISCRETE_ACTION_DIM)
    wm, bm = linear(km, H2, CONTINUOUS_ACTION_DIM)
    ws, bs = linear(ks, H2, CONTINUOUS_ACTION_DIM)

    # Discrete head: pad to lane multiple, cast weight to bf16, keep bias f32.
    pad = DISC_PAD - DISCRETE_ACTION_DIM
    wd_bf16 = jnp.pad(wd, ((0, 0), (0, pad))).astype(jnp.bfloat16)
    bd_p = jnp.pad(bd, ((0, 0), (0, pad)), constant_values=-1e30)

    # Fuse mean | log_std into one lane-dense (32, 128) head.
    wc_p = jnp.zeros((H2, CONT_PAD), jnp.float32)
    wc_p = wc_p.at[:, :CONTINUOUS_ACTION_DIM].set(wm)
    wc_p = wc_p.at[:, CONTINUOUS_ACTION_DIM:2 * CONTINUOUS_ACTION_DIM].set(ws)
    bc_p = jnp.zeros((1, CONT_PAD), jnp.float32)
    bc_p = bc_p.at[:, :CONTINUOUS_ACTION_DIM].set(bm)
    bc_p = bc_p.at[:, CONTINUOUS_ACTION_DIM:2 * CONTINUOUS_ACTION_DIM].set(bs)

    return dict(w1=w1, b1=b1, w2=w2, b2=b2,
                wd=wd, bd=bd, wm=wm, bm=bm, ws=ws, bs=bs,
                wd_bf16=wd_bf16, bd_p=bd_p, wc_p=wc_p, bc_p=bc_p)


def sac_actor_forward(state, p):
    B = state.shape[0]
    # TB=256 fills the v6e/v7x 256x256 MXU M-dim for large batches; for small
    # batches use the smallest sublane-aligned tile to avoid padding waste.
    TB = 256 if B >= 256 else max(8, _round_up(B, 8))
    B_pad = _round_up(B, TB)
    if B_pad != B:
        state = jnp.pad(state, ((0, B_pad - B), (0, 0)))
    grid = (B_pad // TB,)

    def const(shape):
        # Weights/biases: same block every step -> fetched once, VMEM-resident.
        return pl.BlockSpec(shape, lambda i: (0, 0))

    flops = 2 * B_pad * (STATE_DIM * H1 + H1 * H2 + H2 * DISC_PAD + H2 * CONT_PAD)
    bytes_accessed = (
        B_pad * STATE_DIM * 4
        + p["w1"].size * 4 + p["b1"].size * 4
        + p["w2"].size * 4 + p["b2"].size * 4
        + p["wd_bf16"].size * 2 + p["bd_p"].size * 4
        + p["wc_p"].size * 4 + p["bc_p"].size * 4
        + B_pad * DISC_PAD * 4 + B_pad * CONT_PAD * 4
    )

    probs_p, cont = pl.pallas_call(
        sac_actor_kernel,
        out_shape=(
            jax.ShapeDtypeStruct((B_pad, DISC_PAD), jnp.float32),
            jax.ShapeDtypeStruct((B_pad, CONT_PAD), jnp.float32),
        ),
        grid=grid,
        in_specs=[
            pl.BlockSpec((TB, STATE_DIM), lambda i: (i, 0)),
            const((STATE_DIM, H1)), const((1, H1)),
            const((H1, H2)), const((1, H2)),
            const((H2, DISC_PAD)), const((1, DISC_PAD)),
            const((H2, CONT_PAD)), const((1, CONT_PAD)),
        ],
        out_specs=(
            pl.BlockSpec((TB, DISC_PAD), lambda i: (i, 0)),
            pl.BlockSpec((TB, CONT_PAD), lambda i: (i, 0)),
        ),
        compiler_params=pltpu.CompilerParams(
            dimension_semantics=("parallel",),       # shards batch across v7x's 2 TCs
            vmem_limit_bytes=40 * 1024 * 1024,       # ~12 MiB used at TB=256; safe on v5e..v7x
        ),
        cost_estimate=pl.CostEstimate(
            flops=flops,
            transcendentals=B_pad * DISC_PAD,
            bytes_accessed=bytes_accessed,
        ),
    )(state, p["w1"], p["b1"], p["w2"], p["b2"],
      p["wd_bf16"], p["bd_p"], p["wc_p"], p["bc_p"])

    # NOTE: for very large B, downstream consumers can take probs_p[:, :5120]
    # directly (ignoring the 120 zero-prob pad columns) to avoid this HBM copy.
    probs = probs_p[:B, :DISCRETE_ACTION_DIM]
    mean = cont[:B, :CONTINUOUS_ACTION_DIM]
    log_std = cont[:B, CONTINUOUS_ACTION_DIM:2 * CONTINUOUS_ACTION_DIM]
    return probs, mean, log_std


def sac_actor_reference(state, p):
    """Pure-JAX reference. The discrete head uses the same bf16-quantized weight
    the kernel uses (an intentional perf tradeoff), so the check isolates kernel
    correctness; mean/log_std use the original f32 weights."""
    h1 = jnp.maximum(state @ p["w1"] + p["b1"], 0.0)
    h2 = jnp.maximum(h1 @ p["w2"] + p["b2"], 0.0)
    wd = p["wd_bf16"][:, :DISCRETE_ACTION_DIM].astype(jnp.float32)
    logits = h2.astype(jnp.bfloat16).astype(jnp.float32) @ wd + p["bd"]
    probs = jax.nn.softmax(logits, axis=-1)
    mean = h2 @ p["wm"] + p["bm"]
    log_std = jnp.clip(h2 @ p["ws"] + p["bs"], -20.0, 2.0)
    return probs, mean, log_std


if __name__ == "__main__":
    key = jax.random.PRNGKey(0)
    k_param, k_state = jax.random.split(key)

    params = init_params(k_param)
    state = jax.random.normal(k_state, (2, STATE_DIM), jnp.float32)

    probs, mean, log_std = jax.block_until_ready(sac_actor_forward(state, params))

    probs_r, mean_r, log_std_r = sac_actor_reference(state, params)
    assert probs.shape == (2, DISCRETE_ACTION_DIM)
    assert mean.shape == (2, CONTINUOUS_ACTION_DIM)
    assert log_std.shape == (2, CONTINUOUS_ACTION_DIM)
    # probs tolerance covers the approximate (EUP) reciprocal in the softmax.
    assert jnp.allclose(probs, probs_r, rtol=1e-2, atol=1e-6)
    assert jnp.allclose(jnp.sum(probs, axis=-1), 1.0, atol=1e-2)
    assert jnp.allclose(mean, mean_r, atol=1e-4)
    assert jnp.allclose(log_std, log_std_r, atol=1e-4)

    print("KERNEL_OK")
</pallas_src>

<mosaic_0001>
module attributes {stable_mosaic.version = 11 : i64} {
  func.func @sac_actor_kernel(%arg0: i32, %arg1: memref<8x10xf32, #tpu.memory_space<vmem>>, %arg2: memref<10x64xf32, #tpu.memory_space<vmem>>, %arg3: memref<1x64xf32, #tpu.memory_space<vmem>>, %arg4: memref<64x32xf32, #tpu.memory_space<vmem>>, %arg5: memref<1x32xf32, #tpu.memory_space<vmem>>, %arg6: memref<32x5120xbf16, #tpu.memory_space<vmem>>, %arg7: memref<1x5120xf32, #tpu.memory_space<vmem>>, %arg8: memref<32x128xf32, #tpu.memory_space<vmem>>, %arg9: memref<1x128xf32, #tpu.memory_space<vmem>>, %arg10: memref<8x5120xf32, #tpu.memory_space<vmem>>, %arg11: memref<8x128xf32, #tpu.memory_space<vmem>>) attributes {dimension_semantics = [#tpu.dimension_semantics<parallel>], iteration_bounds = array<i64: 1>, scalar_prefetch = 0 : i64, scratch_operands = 0 : i64, tpu.core_type = #tpu.core_type<tc>, window_params = [{transform_indices = @transform_0, window_bounds = array<i64: 8, 10>}, {pipeline_mode = #tpu.pipeline_mode<synchronous>, transform_indices = @transform_1, window_bounds = array<i64: 10, 64>}, {pipeline_mode = #tpu.pipeline_mode<synchronous>, transform_indices = @transform_2, window_bounds = array<i64: 1, 64>}, {pipeline_mode = #tpu.pipeline_mode<synchronous>, transform_indices = @transform_3, window_bounds = array<i64: 64, 32>}, {pipeline_mode = #tpu.pipeline_mode<synchronous>, transform_indices = @transform_4, window_bounds = array<i64: 1, 32>}, {pipeline_mode = #tpu.pipeline_mode<synchronous>, transform_indices = @transform_5, window_bounds = array<i64: 32, 5120>}, {pipeline_mode = #tpu.pipeline_mode<synchronous>, transform_indices = @transform_6, window_bounds = array<i64: 1, 5120>}, {pipeline_mode = #tpu.pipeline_mode<synchronous>, transform_indices = @transform_7, window_bounds = array<i64: 32, 128>}, {pipeline_mode = #tpu.pipeline_mode<synchronous>, transform_indices = @transform_8, window_bounds = array<i64: 1, 128>}, {transform_indices = @transform_9, window_bounds = array<i64: 8, 5120>}, {transform_indices = @transform_10, window_bounds = array<i64: 8, 128>}]} {
    %c0 = arith.constant 0 : index
    %c0_0 = arith.constant 0 : index
    %0 = vector.load %arg1[%c0, %c0_0] : memref<8x10xf32, #tpu.memory_space<vmem>>, vector<8x10xf32>
    %c0_1 = arith.constant 0 : index
    %c0_2 = arith.constant 0 : index
    %1 = vector.load %arg2[%c0_1, %c0_2] : memref<10x64xf32, #tpu.memory_space<vmem>>, vector<10x64xf32>
    %cst = arith.constant dense<0.000000e+00> : vector<8x64xf32>
    %2 = tpu.matmul %0, %1, %cst {dimension_numbers = #tpu.dot_dimension_numbers<[1], [0], [0], [1], [0, 0, 1, 1], [], []>} : vector<8x10xf32>, vector<10x64xf32>, vector<8x64xf32> -> vector<8x64xf32>
    %c0_3 = arith.constant 0 : index
    %c0_4 = arith.constant 0 : index
    %3 = vector.load %arg3[%c0_3, %c0_4] : memref<1x64xf32, #tpu.memory_space<vmem>>, vector<1x64xf32>
    %4 = vector.broadcast %3 : vector<1x64xf32> to vector<8x64xf32>
    %5 = arith.addf %2, %4 : vector<8x64xf32>
    %cst_5 = arith.constant 0.000000e+00 : f32
    %6 = vector.broadcast %cst_5 : f32 to vector<8x64xf32>
    %7 = arith.maximumf %5, %6 : vector<8x64xf32>
    %c0_6 = arith.constant 0 : index
    %c0_7 = arith.constant 0 : index
    %8 = vector.load %arg4[%c0_6, %c0_7] : memref<64x32xf32, #tpu.memory_space<vmem>>, vector<64x32xf32>
    %cst_8 = arith.constant dense<0.000000e+00> : vector<8x32xf32>
    %9 = tpu.matmul %7, %8, %cst_8 {dimension_numbers = #tpu.dot_dimension_numbers<[1], [0], [0], [1], [0, 0, 1, 1], [], []>} : vector<8x64xf32>, vector<64x32xf32>, vector<8x32xf32> -> vector<8x32xf32>
    %c0_9 = arith.constant 0 : index
    %c0_10 = arith.constant 0 : index
    %10 = vector.load %arg5[%c0_9, %c0_10] : memref<1x32xf32, #tpu.memory_space<vmem>>, vector<1x32xf32>
    %11 = vector.broadcast %10 : vector<1x32xf32> to vector<8x32xf32>
    %12 = arith.addf %9, %11 : vector<8x32xf32>
    %cst_11 = arith.constant 0.000000e+00 : f32
    %13 = vector.broadcast %cst_11 : f32 to vector<8x32xf32>
    %14 = arith.maximumf %12, %13 : vector<8x32xf32>
    %15 = arith.truncf %14 : vector<8x32xf32> to vector<8x32xbf16>
    %c0_12 = arith.constant 0 : index
    %c0_13 = arith.constant 0 : index
    %16 = vector.load %arg6[%c0_12, %c0_13] : memref<32x5120xbf16, #tpu.memory_space<vmem>>, vector<32x5120xbf16>
    %cst_14 = arith.constant dense<0.000000e+00> : vector<8x5120xf32>
    %17 = tpu.matmul %15, %16, %cst_14 {dimension_numbers = #tpu.dot_dimension_numbers<[1], [0], [0], [1], [0, 0, 1, 1], [], []>} : vector<8x32xbf16>, vector<32x5120xbf16>, vector<8x5120xf32> -> vector<8x5120xf32>
    %c0_15 = arith.constant 0 : index
    %c0_16 = arith.constant 0 : index
    %18 = vector.load %arg7[%c0_15, %c0_16] : memref<1x5120xf32, #tpu.memory_space<vmem>>, vector<1x5120xf32>
    %19 = vector.broadcast %18 : vector<1x5120xf32> to vector<8x5120xf32>
    %20 = arith.addf %17, %19 : vector<8x5120xf32>
    %cst_17 = arith.constant dense<0xFF800000> : vector<8xf32>
    %21 = vector.multi_reduction <maximumf>, %20, %cst_17 [1] : vector<8x5120xf32> to vector<8xf32>
    %22 = vector.shape_cast %21 : vector<8xf32> to vector<8x1xf32>
    %23 = vector.broadcast %22 : vector<8x1xf32> to vector<8x5120xf32>
    %24 = arith.subf %20, %23 : vector<8x5120xf32>
    %25 = math.exp %24 : vector<8x5120xf32>
    %cst_18 = arith.constant dense<0.000000e+00> : vector<8xf32>
    %26 = vector.multi_reduction <add>, %25, %cst_18 [1] : vector<8x5120xf32> to vector<8xf32>
    %27 = vector.shape_cast %26 : vector<8xf32> to vector<8x1xf32>
    %28 = tpu.reciprocal %27 {approx = true} : vector<8x1xf32> -> vector<8x1xf32>
    %29 = vector.broadcast %28 : vector<8x1xf32> to vector<8x5120xf32>
    %30 = arith.mulf %25, %29 : vector<8x5120xf32>
    %c0_19 = arith.constant 0 : index
    %c0_20 = arith.constant 0 : index
    %31 = vector.load %arg10[%c0_19, %c0_20] : memref<8x5120xf32, #tpu.memory_space<vmem>>, vector<8x5120xf32>
    tpu.vector_store %arg10[%c0_19, %c0_20], %30 {strides = array<i32>} : memref<8x5120xf32, #tpu.memory_space<vmem>>, vector<8x5120xf32>,
    %c0_21 = arith.constant 0 : index
    %c0_22 = arith.constant 0 : index
    %32 = vector.load %arg8[%c0_21, %c0_22] : memref<32x128xf32, #tpu.memory_space<vmem>>, vector<32x128xf32>
    %cst_23 = arith.constant dense<0.000000e+00> : vector<8x128xf32>
    %33 = tpu.matmul %14, %32, %cst_23 {dimension_numbers = #tpu.dot_dimension_numbers<[1], [0], [0], [1], [0, 0, 1, 1], [], []>} : vector<8x32xf32>, vector<32x128xf32>, vector<8x128xf32> -> vector<8x128xf32>
    %c0_24 = arith.constant 0 : index
    %c0_25 = arith.constant 0 : index
    %34 = vector.load %arg9[%c0_24, %c0_25] : memref<1x128xf32, #tpu.memory_space<vmem>>, vector<1x128xf32>
    %35 = vector.broadcast %34 : vector<1x128xf32> to vector<8x128xf32>
    %36 = arith.addf %33, %35 : vector<8x128xf32>
    %37 = tpu.iota {dimensions = array<i32: 1>} : vector<8x128xi32>
    %c9_i32 = arith.constant 9 : i32
    %38 = vector.broadcast %c9_i32 : i32 to vector<8x128xi32>
    %39 = arith.cmpi sge, %37, %38 : vector<8x128xi32>
    %c18_i32 = arith.constant 18 : i32
    %40 = vector.broadcast %c18_i32 : i32 to vector<8x128xi32>
    %41 = arith.cmpi slt, %37, %40 : vector<8x128xi32>
    %42 = arith.andi %39, %41 : vector<8x128xi1>
    %cst_26 = arith.constant -2.000000e+01 : f32
    %cst_27 = arith.constant 2.000000e+00 : f32
    %43 = vector.broadcast %cst_26 : f32 to vector<8x128xf32>
    %44 = arith.maximumf %43, %36 : vector<8x128xf32>
    %45 = vector.broadcast %cst_27 : f32 to vector<8x128xf32>
    %46 = arith.minimumf %45, %44 : vector<8x128xf32>
    %47 = arith.select %42, %46, %36 : vector<8x128xi1>, vector<8x128xf32>
    %c0_28 = arith.constant 0 : index
    %c0_29 = arith.constant 0 : index
    %48 = vector.load %arg11[%c0_28, %c0_29] : memref<8x128xf32, #tpu.memory_space<vmem>>, vector<8x128xf32>
    tpu.vector_store %arg11[%c0_28, %c0_29], %47 {strides = array<i32>} : memref<8x128xf32, #tpu.memory_space<vmem>>, vector<8x128xf32>,
    return
  }
  func.func @transform_0(%arg0: i32) -> (i32, i32) {
    %c0_i32 = arith.constant 0 : i32
    %c0_i32_0 = arith.constant 0 : i32
    return %arg0, %c0_i32 : i32, i32
  }
  func.func @transform_1(%arg0: i32) -> (i32, i32) {
    %c0_i32 = arith.constant 0 : i32
    %c0_i32_0 = arith.constant 0 : i32
    %c0_i32_1 = arith.constant 0 : i32
    return %c0_i32, %c0_i32_0 : i32, i32
  }
  func.func @transform_2(%arg0: i32) -> (i32, i32) {
    %c0_i32 = arith.constant 0 : i32
    %c0_i32_0 = arith.constant 0 : i32
    %c0_i32_1 = arith.constant 0 : i32
    return %c0_i32, %c0_i32_0 : i32, i32
  }
  func.func @transform_3(%arg0: i32) -> (i32, i32) {
    %c0_i32 = arith.constant 0 : i32
    %c0_i32_0 = arith.constant 0 : i32
    %c0_i32_1 = arith.constant 0 : i32
    return %c0_i32, %c0_i32_0 : i32, i32
  }
  func.func @transform_4(%arg0: i32) -> (i32, i32) {
    %c0_i32 = arith.constant 0 : i32
    %c0_i32_0 = arith.constant 0 : i32
    %c0_i32_1 = arith.constant 0 : i32
    return %c0_i32, %c0_i32_0 : i32, i32
  }
  func.func @transform_5(%arg0: i32) -> (i32, i32) {
    %c0_i32 = arith.constant 0 : i32
    %c0_i32_0 = arith.constant 0 : i32
    %c0_i32_1 = arith.constant 0 : i32
    return %c0_i32, %c0_i32_0 : i32, i32
  }
  func.func @transform_6(%arg0: i32) -> (i32, i32) {
    %c0_i32 = arith.constant 0 : i32
    %c0_i32_0 = arith.constant 0 : i32
    %c0_i32_1 = arith.constant 0 : i32
    return %c0_i32, %c0_i32_0 : i32, i32
  }
  func.func @transform_7(%arg0: i32) -> (i32, i32) {
    %c0_i32 = arith.constant 0 : i32
    %c0_i32_0 = arith.constant 0 : i32
    %c0_i32_1 = arith.constant 0 : i32
    return %c0_i32, %c0_i32_0 : i32, i32
  }
  func.func @transform_8(%arg0: i32) -> (i32, i32) {
    %c0_i32 = arith.constant 0 : i32
    %c0_i32_0 = arith.constant 0 : i32
    %c0_i32_1 = arith.constant 0 : i32
    return %c0_i32, %c0_i32_0 : i32, i32
  }
  func.func @transform_9(%arg0: i32) -> (i32, i32) {
    %c0_i32 = arith.constant 0 : i32
    %c0_i32_0 = arith.constant 0 : i32
    return %arg0, %c0_i32 : i32, i32
  }
  func.func @transform_10(%arg0: i32) -> (i32, i32) {
    %c0_i32 = arith.constant 0 : i32
    %c0_i32_0 = arith.constant 0 : i32
    return %arg0, %c0_i32 : i32, i32
  }
}

</mosaic_0001>

<bundles_post_ra>
// kernel: tpu_custom_call.1
= control target key start
LH: loop header
LB: loop body
LE: loop exit
PB: predicated region body
PF: predicated region fallthrough
CT: control target
= control target key end

     0   :  { %16 = vsyncpa [#allocation3], 0  ;;  %s3381_s0 = inlined_call_operand.vmem [shape: f32[8,10], index: 0, kind: input, shape index: {}]   ;;  %s3382_s1 = inlined_call_operand.vmem [shape: f32[10,64], index: 1, kind: input, shape index: {}]   ;;  %s3383_s2 = inlined_call_operand.vmem [shape: f32[1,64], index: 2, kind: input, shape index: {}]   ;;  %s3384_s3 = inlined_call_operand.vmem [shape: f32[64,32], index: 3, kind: input, shape index: {}]   ;;  %s3385_s4 = inlined_call_operand.vmem [shape: f32[1,32], index: 4, kind: input, shape index: {}]   ;;  %s3386_s5 = inlined_call_operand.hbm [shape: bf16[32,5120], index: 5, kind: input, shape index: {}]   ;;  %s3387_s6 = inlined_call_operand.vmem [shape: f32[1,5120], index: 6, kind: input, shape index: {}]   ;;  %s3388_s7 = inlined_call_operand.vmem [shape: f32[32,128], index: 7, kind: input, shape index: {}]   ;;  %s3389_s8 = inlined_call_operand.vmem [shape: f32[1,128], index: 8, kind: input, shape index: {}]   ;;  %s3390_s9 = inlined_call_operand.hbm [shape: f32[8,5120], index: 9, kind: output, shape index: {0}]   ;;  %s3391_s10 = inlined_call_operand.hbm [shape: f32[8,128], index: 10, kind: output, shape index: {1}]  }
   0x1   :  { %17 = vsyncpa [#allocation4], 0 }
   0x2   :  { %18 = vsyncpa [#allocation7], 0  ;;  %s2467_s13 = smov [#allocation2]  }
   0x3   :  { %s34_s14 = sshll.u32 %s2467_s13, 4  ;;  %s35_s14 = int_to_ptr.vmem [resolvable:$true] %s34_s14 }
   0x4   :  { %s2409_s15 = scalar_lea.vmem %s35_s14, 10240  ;;  %p2414_p1 = scmp.lt.s32.totalorder %s35_s14, %s35_s14 }
   0x5   :  { %p2410_p0 = scmp.ne.s32.totalorder %s35_s14, %s2409_s15  ;;  %p2415_p2 = scmp.lt.s32.totalorder %s2409_s15, %s2409_s15 }
   0x7   :  { %p2416_p3 = por %p2415_p2, %p2414_p1 }
   0x9   :  { %p2417_p4 = pnand %p2416_p3, %p2410_p0 }
   0xb   :  { %2420 = shalt.err (!%p2417_p4)
}
   0xc   :  { %s2468_s16 = smov 2560   ;;  %s2469_s17 = smov 160  }
   0xd   :  { %40 = dma.hbm_to_vmem [thread:$0]  %s3386_s5, 10240, %s35_s14, [#allocation3], %s2468_s16, %s2468_s16, %s2469_s17  }
   0xe   :  { %2461 = dma.done.wait [#allocation3], 10240  }
   0xf   :  { %2462 = vsyncadd [#allocation3], 4294957056  ;;  %v2470_v0 = vmov 0.0   ;;  %vm2471_vm0 = vmmov 0   ;;  %vm65_vm1 = vcmask 1041408   ;;  %v52_v2 = vld [vmem:[%s3382_s1] sm:$0xff] }
  0x10   :  { %2274 = vmatprep.subr.mxu0 %v2470_v0  ;;  %2278 = vmatprep.mubr.msk.f32.mxu0 %vm2471_vm0, %v2470_v0  ;;  %v53_v1 = vld [vmem:[%s3382_s1 + $0x8] sm:$0x3]  ;;  %v51_v3 = vld [vmem:[%s3381_s0] sm:$0xff]  ;;  %vm61_vm2 = vcmask 80896   ;;  %v147_v4 = vld [vmem:[%s3384_s3 + $0x38] sm:$0xff]  ;;  %vm155_vm3 = vcmask 523264  }
  0x11   :  { %2281 = vmatprep.subr.mxu1 %v2470_v0  ;;  %2297 = vmatprep.mubr.msk.f32.mxu1 %vm2471_vm0, %v2470_v0  ;;  %v146_v5 = vld [vmem:[%s3384_s3 + $0x30] sm:$0xff]  ;;  %v145_v6 = vld [vmem:[%s3384_s3 + $0x28] sm:$0xff]  ;;  %v144_v7 = vld [vmem:[%s3384_s3 + $0x20] sm:$0xff]  ;;  %v2472_v39 = vmov 0   ;;  %vm921_vm4 = vcmask 261120  }
  0x12   :  { %2275 = vmatpush3.msk.msra.mxu0 %vm65_vm1, %v53_v1  ;;  %2282 = vmatpush3.msra.mxu1 %v147_v4  ;;  %v143_v8 = vld [vmem:[%s3384_s3 + $0x18] sm:$0xff]  ;;  %v142_v9 = vld [vmem:[%s3384_s3 + $0x10] sm:$0xff]  ;;  %v141_v10 = vld [vmem:[%s3384_s3 + $0x8] sm:$0xff] }
  0x13   :  { %2276 = vmatprep.subr.mxu0 %v2470_v0  ;;  %2283 = vmatprep.subr.mxu1 %v2470_v0  ;;  %v140_v11 = vld [vmem:[%s3384_s3] sm:$0xff]  ;;  %v273_v14 = vld [vmem:[#allocation2 + $0x150] sm:$0xff]  ;;  %v272_v33 = vld [vmem:[#allocation2 + $0x148] sm:$0xff] }
  0x14   :  { %2277 = vmatpush3.msra.mxu0 %v52_v2  ;;  %2284 = vmatpush3.msra.mxu1 %v146_v5  ;;  %v271_v12 = vld [vmem:[#allocation2 + $0x140] sm:$0xff]  ;;  %v293_v17 = vld [vmem:[#allocation2 + $0x1f0] sm:$0xff]  ;;  %v292_v34 = vld [vmem:[#allocation2 + $0x1e8] sm:$0xff] }
  0x15   :  { %2279 = vmatmul.mubr.msk.f32.vlgmr.msra.gmra.mxu0 %vm61_vm2, %v51_v3  ;;  %2285 = vmatprep.subr.mxu1 %v2470_v0  ;;  %v291_v13 = vld [vmem:[#allocation2 + $0x1e0] sm:$0xff]  ;;  %v2199_v18 = vcombine.low %v273_v14, %v293_v17  ;;  %v2200_v19 = vcombine.high %v273_v14, %v293_v17  ;;  %v233_v27 = vld [vmem:[#allocation2 + $0x10] sm:$0xff]  ;;  %v2197_v36 = vcombine.low %v272_v33, %v292_v34  ;;  %v232_v45 = vld [vmem:[#allocation2 + $0x8] sm:$0xff] }
  0x16   :  { %2286 = vmatpush3.msra.mxu1 %v145_v6  ;;  %v2195_v15 = vcombine.low %v271_v12, %v291_v13  ;;  %v2196_v16 = vcombine.high %v271_v12, %v291_v13  ;;  %v2150_v20 = vld [vmem:[%s3383_s2] ss:$0 sm:$0xff]  ;;  %v253_v29 = vld [vmem:[#allocation2 + $0xb0] sm:$0xff]  ;;  %v2198_v37 = vcombine.high %v272_v33, %v292_v34  ;;  %957 = vmatprep.mubr.bf16.mxu0 %v2472_v39  ;;  %v252_v47 = vld [vmem:[#allocation2 + $0xa8] sm:$0xff] }
  0x17   :  { %2287 = vmatprep.subr.mxu1 %v2470_v0  ;;  %v231_v25 = vld [vmem:[#allocation2] sm:$0xff]  ;;  %v2159_v31 = vcombine.low %v233_v27, %v253_v29  ;;  %v2160_v32 = vcombine.high %v233_v27, %v253_v29  ;;  %v2158_v52 = vcombine.high %v232_v45, %v252_v47  ;;  %v274_v54 = vld [vmem:[#allocation2 + $0x158] sm:$0xff]  ;;  %v277_v56 = vld [vmem:[#allocation2 + $0x170] sm:$0xff]  ;;  %v2157_v58 = vcombine.low %v232_v45, %v252_v47 }
  0x18   :  { %2288 = vmatpush3.msra.mxu1 %v144_v7  ;;  %937 = vmatprep.subr.bf16.mxu0 %v2196_v16  ;;  %v251_v26 = vld [vmem:[#allocation2 + $0xa0] sm:$0xff]  ;;  %v294_v55 = vld [vmem:[#allocation2 + $0x1f8] sm:$0xff]  ;;  %v297_v57 = vld [vmem:[#allocation2 + $0x210] sm:$0xff] }
  0x19   :  { %2289 = vmatprep.subr.mxu1 %v2470_v0  ;;  %938 = vmatpush1.bf16.msra.mxu0 %v2195_v15  ;;  %v2156_v28 = vcombine.high %v231_v25, %v251_v26  ;;  %v2155_v30 = vcombine.low %v231_v25, %v251_v26  ;;  %v275_v35 = vld [vmem:[#allocation2 + $0x160] sm:$0xff]  ;;  %v2202_v60 = vcombine.high %v274_v54, %v294_v55  ;;  %v234_v62 = vld [vmem:[#allocation2 + $0x18] sm:$0xff]  ;;  %v237_v1 = vld [vmem:[#allocation2 + $0x30] sm:$0xff] }
  0x1a   :  { %2290 = vmatpush3.msra.mxu1 %v143_v8  ;;  %v295_v38 = vld [vmem:[#allocation2 + $0x200] sm:$0xff]  ;;  %v2208_v61 = vcombine.high %v277_v56, %v297_v57  ;;  %v254_v63 = vld [vmem:[#allocation2 + $0xb8] sm:$0xff]  ;;  %v257_v2 = vld [vmem:[#allocation2 + $0xd0] sm:$0xff]  ;;  %v2201_v3 = vcombine.low %v274_v54, %v294_v55  ;;  %v2207_v4 = vcombine.low %v277_v56, %v297_v57 }
  0x1b   :  { %2291 = vmatprep.subr.mxu1 %v2470_v0  ;;  %939 = vmatprep.subr.bf16.mxu0 %v2156_v28  ;;  %v2203_v40 = vcombine.low %v275_v35, %v295_v38  ;;  %v2204_v41 = vcombine.high %v275_v35, %v295_v38  ;;  %v2153_v42 = vld [vmem:[%s3385_s4] ss:$0 sm:$0xff]  ;;  %v2162_v5 = vcombine.high %v234_v62, %v254_v63  ;;  %v276_v7 = vld [vmem:[#allocation2 + $0x168] sm:$0xff]  ;;  %v281_v25 = vld [vmem:[#allocation2 + $0x190] sm:$0xff] }
  0x1c   :  { %2292 = vmatpush3.msra.mxu1 %v142_v9  ;;  %v235_v48 = vld [vmem:[#allocation2 + $0x20] sm:$0xff]  ;;  %v2168_v6 = vcombine.high %v237_v1, %v257_v2  ;;  %v296_v8 = vld [vmem:[#allocation2 + $0x208] sm:$0xff]  ;;  %v2167_v12 = vcombine.low %v237_v1, %v257_v2  ;;  %v301_v26 = vld [vmem:[#allocation2 + $0x230] sm:$0xff] }
  0x1d   :  { %2293 = vmatprep.subr.mxu1 %v2470_v0  ;;  %940 = vmatpush1.bf16.msra.mxu0 %v2155_v30  ;;  %v255_v49 = vld [vmem:[#allocation2 + $0xc0] sm:$0xff]  ;;  %v2206_v13 = vcombine.high %v276_v7, %v296_v8  ;;  %v236_v15 = vld [vmem:[#allocation2 + $0x28] sm:$0xff]  ;;  %v2216_v30 = vcombine.high %v281_v25, %v301_v26  ;;  %v241_v33 = vld [vmem:[#allocation2 + $0x50] sm:$0xff] }
  0x1e   :  { %2294 = vmatpush3.msra.mxu1 %v141_v10  ;;  %978 = vmatprep.subr.bf16.mxu0 %v2198_v37  ;;  %v2164_v53 = vcombine.high %v235_v48, %v255_v49  ;;  %v2163_v59 = vcombine.low %v235_v48, %v255_v49  ;;  %v279_v9 = vld [vmem:[#allocation2 + $0x180] sm:$0xff]  ;;  %v256_v16 = vld [vmem:[#allocation2 + $0xc8] sm:$0xff]  ;;  %v261_v34 = vld [vmem:[#allocation2 + $0xf0] sm:$0xff] }
  0x1f   :  { %2295 = vmatprep.subr.mxu1 %v2470_v0  ;;  %v299_v10 = vld [vmem:[#allocation2 + $0x220] sm:$0xff]  ;;  %v2165_v27 = vcombine.low %v236_v15, %v256_v16  ;;  %v2176_v38 = vcombine.high %v241_v33, %v261_v34  ;;  %v2175_v45 = vcombine.low %v241_v33, %v261_v34  ;;  %v240_v48 = vld [vmem:[#allocation2 + $0x48] sm:$0xff] }
  0x20   :  { %2296 = vmatpush3.msra.mxu1 %v140_v11  ;;  %v2161_v11 = vcombine.low %v234_v62, %v254_v63  ;;  %v2212_v14 = vcombine.high %v279_v9, %v299_v10  ;;  %v239_v17 = vld [vmem:[#allocation2 + $0x40] sm:$0xff]  ;;  %v260_v49 = vld [vmem:[#allocation2 + $0xe8] sm:$0xff] }
  0x21   :  { %1019 = vmatprep.subr.bf16.mxu1 %v2200_v19  ;;  %v2205_v19 = vcombine.low %v276_v7, %v296_v8  ;;  %v2174_v56 = vcombine.high %v240_v48, %v260_v49  ;;  %v2173_v62 = vcombine.low %v240_v48, %v260_v49  ;;  %v248_v49 = vld [vmem:[#allocation2 + $0x88] sm:$0xff] }
  0xd5   :  { %v135_v21 = vpop.f32.mrf.mxu0 }
  0xd6   :  { %v136_v22 = vadd.f32 %v2150_v20, %v135_v21  ;;  %v2211_v20 = vcombine.low %v279_v9, %v299_v10  ;;  %v2166_v21 = vcombine.high %v236_v15, %v256_v16 }
  0xd7   :  { %v2280_v23 = vpop.f32.mrf.mxu0 }
  0xd8   :  { %v139_v24 = vmax.f32 %v136_v22, 0.0  ;;  %v278_v23 = vld [vmem:[#allocation2 + $0x178] sm:$0xff] }
  0xda   :  { %2298 = vmatmul.mubr.msk.f32.vlgmr.msra.gmra.mxu1 %vm155_vm3, %v139_v24  ;;  %v298_v24 = vld [vmem:[#allocation2 + $0x218] sm:$0xff] }
  0xdb   :  { %1020 = vmatpush1.bf16.msra.mxu1 %v2199_v18  ;;  %1039 = vmatprep.mubr.bf16.mxu1 %v2472_v39  ;;  %v259_v18 = vld [vmem:[#allocation2 + $0xe0] sm:$0xff]  ;;  %v2210_v29 = vcombine.high %v278_v23, %v298_v24  ;;  %v2209_v35 = vcombine.low %v278_v23, %v298_v24 }
  0xdc   :  { %1021 = vmatprep.subr.bf16.mxu1 %v2160_v32  ;;  %v2172_v22 = vcombine.high %v239_v17, %v259_v18  ;;  %v2171_v28 = vcombine.low %v239_v17, %v259_v18  ;;  %v258_v32 = vld [vmem:[#allocation2 + $0xd8] sm:$0xff] }
  0xdf   :  { %1022 = vmatpush1.bf16.msra.mxu1 %v2159_v31  ;;  %v238_v31 = vld [vmem:[#allocation2 + $0x38] sm:$0xff] }
  0xe0   :  { %1101 = vmatprep.subr.bf16.mxu1 %v2204_v41  ;;  %v2170_v37 = vcombine.high %v238_v31, %v258_v32  ;;  %v300_v41 = vld [vmem:[#allocation2 + $0x228] sm:$0xff] }
 0x19a   :  { %v225_v43 = vpop.f32.mrf.mxu1 }
 0x19b   :  { %v226_v44 = vadd.f32 %v2153_v42, %v225_v43  ;;  %v283_v42 = vld [vmem:[#allocation2 + $0x1a0] sm:$0xff] }
 0x19c   :  { %v2299_v46 = vpop.f32.mrf.mxu1  ;;  %v303_v43 = vld [vmem:[#allocation2 + $0x240] sm:$0xff] }
 0x19d   :  { %v2588_v50 = vmax.f32 %v226_v44, 0.0  ;;  %v2169_v44 = vcombine.low %v238_v31, %v258_v32  ;;  %v2220_v47 = vcombine.high %v283_v42, %v303_v43  ;;  %v2219_v55 = vcombine.low %v283_v42, %v303_v43 }
 0x19f   :  { %v2592_v51 = vpack.c.bf16 %v2588_v50, %v2588_v50 }
 0x1a1   :  { %2235 = vmatmul.mubr.msk.bf16.vlgmr.msra.gmra.mxu0 %vm921_vm4, %v2592_v51  ;;  %2237 = vmatmul.mubr.msk.bf16.vlgmr.msra.gmra.mxu1 %vm921_vm4, %v2592_v51 }
 0x1a2   :  { %979 = vmatpush1.bf16.msra.mxu0 %v2197_v36  ;;  %1102 = vmatpush1.bf16.msra.mxu1 %v2203_v40  ;;  %v2215_v36 = vcombine.low %v281_v25, %v301_v26  ;;  %v280_v40 = vld [vmem:[#allocation2 + $0x188] sm:$0xff] }
 0x1a3   :  { %980 = vmatprep.subr.bf16.mxu0 %v2158_v52  ;;  %1103 = vmatprep.subr.bf16.mxu1 %v2164_v53  ;;  %v2214_v46 = vcombine.high %v280_v40, %v300_v41  ;;  %v243_v52 = vld [vmem:[#allocation2 + $0x60] sm:$0xff]  ;;  %v2213_v54 = vcombine.low %v280_v40, %v300_v41 }
 0x1a4   :  { %998 = vmatprep.mubr.bf16.mxu0 %v2472_v39  ;;  %1121 = vmatprep.mubr.bf16.mxu1 %v2472_v39  ;;  %v263_v53 = vld [vmem:[#allocation2 + $0x100] sm:$0xff] }
 0x1a5   :  { %v2180_v57 = vcombine.high %v243_v52, %v263_v53  ;;  %v2179_v63 = vcombine.low %v243_v52, %v263_v53  ;;  %v268_v52 = vld [vmem:[#allocation2 + $0x128] sm:$0xff] }
 0x1a6   :  { %981 = vmatpush1.bf16.msra.mxu0 %v2157_v58  ;;  %1104 = vmatpush1.bf16.msra.mxu1 %v2163_v59  ;;  %v282_v58 = vld [vmem:[#allocation2 + $0x198] sm:$0xff] }
 0x1a7   :  { %1060 = vmatprep.subr.bf16.mxu0 %v2202_v60  ;;  %1183 = vmatprep.subr.bf16.mxu1 %v2208_v61  ;;  %v302_v59 = vld [vmem:[#allocation2 + $0x238] sm:$0xff]  ;;  %v285_v60 = vld [vmem:[#allocation2 + $0x1b0] sm:$0xff] }
 0x1a8   :  { %v305_v61 = vld [vmem:[#allocation2 + $0x250] sm:$0xff]  ;;  %v2218_v1 = vcombine.high %v282_v58, %v302_v59  ;;  %v2217_v7 = vcombine.low %v282_v58, %v302_v59  ;;  %v2189_v59 = vcombine.low %v248_v49, %v268_v52 }
 0x1a9   :  { %2236 = vmatmul.mubr.msk.bf16.vlgmr.msra.gmra.mxu0 %vm921_vm4, %v2592_v51  ;;  %2239 = vmatmul.mubr.msk.bf16.vlgmr.msra.gmra.mxu1 %vm921_vm4, %v2592_v51  ;;  %v2224_v2 = vcombine.high %v285_v60, %v305_v61  ;;  %v2223_v8 = vcombine.low %v285_v60, %v305_v61  ;;  %v2030_v58 = vld [vmem:[%s3388_s7 + $0x10] sm:$0xff]  ;;  %v2029_v60 = vld [vmem:[%s3388_s7 + $0x8] sm:$0xff] }
 0x1aa   :  { %1061 = vmatpush1.bf16.msra.mxu0 %v2201_v3  ;;  %1184 = vmatpush1.bf16.msra.mxu1 %v2207_v4  ;;  %v242_v3 = vld [vmem:[#allocation2 + $0x58] sm:$0xff] }
 0x1ab   :  { %1062 = vmatprep.subr.bf16.mxu0 %v2162_v5  ;;  %1185 = vmatprep.subr.bf16.mxu1 %v2168_v6  ;;  %v262_v4 = vld [vmem:[#allocation2 + $0xf8] sm:$0xff]  ;;  %v245_v5 = vld [vmem:[#allocation2 + $0x70] sm:$0xff] }
 0x1ac   :  { %1080 = vmatprep.mubr.bf16.mxu0 %v2472_v39  ;;  %1203 = vmatprep.mubr.bf16.mxu1 %v2472_v39  ;;  %v265_v6 = vld [vmem:[#allocation2 + $0x110] sm:$0xff]  ;;  %v2178_v9 = vcombine.high %v242_v3, %v262_v4  ;;  %v2177_v15 = vcombine.low %v242_v3, %v262_v4 }
 0x1ad   :  { %v2184_v10 = vcombine.high %v245_v5, %v265_v6  ;;  %v2183_v16 = vcombine.low %v245_v5, %v265_v6 }
 0x1ae   :  { %1063 = vmatpush1.bf16.msra.mxu0 %v2161_v11  ;;  %1186 = vmatpush1.bf16.msra.mxu1 %v2167_v12  ;;  %v284_v11 = vld [vmem:[#allocation2 + $0x1a8] sm:$0xff] }
 0x1af   :  { %1142 = vmatprep.subr.bf16.mxu0 %v2206_v13  ;;  %1265 = vmatprep.subr.bf16.mxu1 %v2212_v14  ;;  %v304_v12 = vld [vmem:[#allocation2 + $0x248] sm:$0xff]  ;;  %v287_v13 = vld [vmem:[#allocation2 + $0x1c0] sm:$0xff] }
 0x1b0   :  { %v307_v14 = vld [vmem:[#allocation2 + $0x260] sm:$0xff]  ;;  %v2222_v17 = vcombine.high %v284_v11, %v304_v12  ;;  %v2221_v23 = vcombine.low %v284_v11, %v304_v12 }
 0x1b1   :  { %2238 = vmatmul.mubr.msk.bf16.vlgmr.msra.gmra.mxu0 %vm921_vm4, %v2592_v51  ;;  %2241 = vmatmul.mubr.msk.bf16.vlgmr.msra.gmra.mxu1 %vm921_vm4, %v2592_v51  ;;  %v2228_v18 = vcombine.high %v287_v13, %v307_v14  ;;  %v2227_v24 = vcombine.low %v287_v13, %v307_v14 }
 0x1b2   :  { %1143 = vmatpush1.bf16.msra.mxu0 %v2205_v19  ;;  %1266 = vmatpush1.bf16.msra.mxu1 %v2211_v20  ;;  %v244_v19 = vld [vmem:[#allocation2 + $0x68] sm:$0xff] }
 0x1b3   :  { %1144 = vmatprep.subr.bf16.mxu0 %v2166_v21  ;;  %1267 = vmatprep.subr.bf16.mxu1 %v2172_v22  ;;  %v264_v20 = vld [vmem:[#allocation2 + $0x108] sm:$0xff]  ;;  %v247_v21 = vld [vmem:[#allocation2 + $0x80] sm:$0xff] }
 0x1b4   :  { %1162 = vmatprep.mubr.bf16.mxu0 %v2472_v39  ;;  %1285 = vmatprep.mubr.bf16.mxu1 %v2472_v39  ;;  %v267_v22 = vld [vmem:[#allocation2 + $0x120] sm:$0xff]  ;;  %v2182_v25 = vcombine.high %v244_v19, %v264_v20  ;;  %v2181_v31 = vcombine.low %v244_v19, %v264_v20 }
 0x1b5   :  { %v2188_v26 = vcombine.high %v247_v21, %v267_v22  ;;  %v2187_v32 = vcombine.low %v247_v21, %v267_v22 }
 0x1b6   :  { %1145 = vmatpush1.bf16.msra.mxu0 %v2165_v27  ;;  %1268 = vmatpush1.bf16.msra.mxu1 %v2171_v28  ;;  %v286_v27 = vld [vmem:[#allocation2 + $0x1b8] sm:$0xff] }
 0x1b7   :  { %1224 = vmatprep.subr.bf16.mxu0 %v2210_v29  ;;  %1347 = vmatprep.subr.bf16.mxu1 %v2216_v30  ;;  %v306_v28 = vld [vmem:[#allocation2 + $0x258] sm:$0xff]  ;;  %v289_v29 = vld [vmem:[#allocation2 + $0x1d0] sm:$0xff] }
 0x1b8   :  { %v309_v30 = vld [vmem:[#allocation2 + $0x270] sm:$0xff]  ;;  %v2226_v33 = vcombine.high %v286_v27, %v306_v28  ;;  %v2225_v40 = vcombine.low %v286_v27, %v306_v28 }
 0x1b9   :  { %2240 = vmatmul.mubr.msk.bf16.vlgmr.msra.gmra.mxu0 %vm921_vm4, %v2592_v51  ;;  %2243 = vmatmul.mubr.msk.bf16.vlgmr.msra.gmra.mxu1 %vm921_vm4, %v2592_v51  ;;  %v2232_v34 = vcombine.high %v289_v29, %v309_v30  ;;  %v2231_v41 = vcombine.low %v289_v29, %v309_v30 }
 0x1ba   :  { %1225 = vmatpush1.bf16.msra.mxu0 %v2209_v35  ;;  %1348 = vmatpush1.bf16.msra.mxu1 %v2215_v36  ;;  %v246_v35 = vld [vmem:[#allocation2 + $0x78] sm:$0xff] }
 0x1bb   :  { %1226 = vmatprep.subr.bf16.mxu0 %v2170_v37  ;;  %1349 = vmatprep.subr.bf16.mxu1 %v2176_v38  ;;  %v266_v36 = vld [vmem:[#allocation2 + $0x118] sm:$0xff]  ;;  %v249_v37 = vld [vmem:[#allocation2 + $0x90] sm:$0xff] }
 0x1bc   :  { %1244 = vmatprep.mubr.bf16.mxu0 %v2472_v39  ;;  %1367 = vmatprep.mubr.bf16.mxu1 %v2472_v39  ;;  %v269_v38 = vld [vmem:[#allocation2 + $0x130] sm:$0xff]  ;;  %v2186_v42 = vcombine.high %v246_v35, %v266_v36 }
 0x1bd   :  { %v2192_v43 = vcombine.high %v249_v37, %v269_v38 }
 0x1be   :  { %1227 = vmatpush1.bf16.msra.mxu0 %v2169_v44  ;;  %1350 = vmatpush1.bf16.msra.mxu1 %v2175_v45  ;;  %v288_v44 = vld [vmem:[#allocation2 + $0x1c8] sm:$0xff] }
 0x1bf   :  { %1306 = vmatprep.subr.bf16.mxu0 %v2214_v46  ;;  %1429 = vmatprep.subr.bf16.mxu1 %v2220_v47  ;;  %v308_v45 = vld [vmem:[#allocation2 + $0x268] sm:$0xff]  ;;  %v2185_v46 = vcombine.low %v246_v35, %v266_v36  ;;  %v2191_v47 = vcombine.low %v249_v37, %v269_v38 }
 0x1c0   :  { %v2230_v48 = vcombine.high %v288_v44, %v308_v45  ;;  %v2229_v53 = vcombine.low %v288_v44, %v308_v45  ;;  %v3392_v44 = vlaneseq }
 0x1c1   :  { %2242 = vmatmul.mubr.msk.bf16.vlgmr.msra.gmra.mxu0 %vm921_vm4, %v2592_v51  ;;  %2245 = vmatmul.mubr.msk.bf16.vlgmr.msra.gmra.mxu1 %vm921_vm4, %v2592_v51 }
 0x1c2   :  { %1307 = vmatpush1.bf16.msra.mxu0 %v2213_v54  ;;  %1430 = vmatpush1.bf16.msra.mxu1 %v2219_v55  ;;  %v2031_v54 = vld [vmem:[%s3388_s7 + $0x18] sm:$0xff]  ;;  %v2190_v55 = vcombine.high %v248_v49, %v268_v52  ;;  %v322_v49 = vshrl.u32 %v3392_v44, 7 }
 0x1c3   :  { %1308 = vmatprep.subr.bf16.mxu0 %v2174_v56  ;;  %1431 = vmatprep.subr.bf16.mxu1 %v2180_v57  ;;  %v290_v56 = vld [vmem:[#allocation2 + $0x1d8] sm:$0xff] }
 0x1c4   :  { %1326 = vmatprep.mubr.bf16.mxu0 %v2472_v39  ;;  %1449 = vmatprep.mubr.bf16.mxu1 %v2472_v39  ;;  %v310_v57 = vld [vmem:[#allocation2 + $0x278] sm:$0xff] }
 0x1c5   :  { %v2234_v61 = vcombine.high %v290_v56, %v310_v57 }
 0x1c6   :  { %1309 = vmatpush1.bf16.msra.mxu0 %v2173_v62  ;;  %1432 = vmatpush1.bf16.msra.mxu1 %v2179_v63  ;;  %v250_v62 = vld [vmem:[#allocation2 + $0x98] sm:$0xff] }
 0x1c7   :  { %1388 = vmatprep.subr.bf16.mxu0 %v2218_v1  ;;  %1511 = vmatprep.subr.bf16.mxu1 %v2224_v2  ;;  %v270_v63 = vld [vmem:[#allocation2 + $0x138] sm:$0xff]  ;;  %v2028_v1 = vld [vmem:[%s3388_s7] sm:$0xff]  ;;  %v2233_v2 = vcombine.low %v290_v56, %v310_v57  ;;  %v2725_v56 = vsub.s32 0, %v322_v49  ;;  %v2727_v57 = vsub.s32 4, %v322_v49 }
 0x1c8   :  { %v2194_v3 = vcombine.high %v250_v62, %v270_v63  ;;  %v2193_v4 = vcombine.low %v250_v62, %v270_v63  ;;  %v2740_v62 = vsub.s32 3, %v322_v49 }
 0x1c9   :  { %2244 = vmatmul.mubr.msk.bf16.vlgmr.msra.gmra.mxu0 %vm921_vm4, %v2592_v51  ;;  %2247 = vmatmul.mubr.msk.bf16.vlgmr.msra.gmra.mxu1 %vm921_vm4, %v2592_v51 }
 0x1ca   :  { %1389 = vmatpush1.bf16.msra.mxu0 %v2217_v7  ;;  %1512 = vmatpush1.bf16.msra.mxu1 %v2223_v8 }
 0x1cb   :  { %1390 = vmatprep.subr.bf16.mxu0 %v2178_v9  ;;  %1513 = vmatprep.subr.bf16.mxu1 %v2184_v10 }
 0x1cc   :  { %1408 = vmatprep.mubr.bf16.mxu0 %v2472_v39  ;;  %1531 = vmatprep.mubr.bf16.mxu1 %v2472_v39 }
 0x1ce   :  { %1391 = vmatpush1.bf16.msra.mxu0 %v2177_v15  ;;  %1514 = vmatpush1.bf16.msra.mxu1 %v2183_v16 }
 0x1cf   :  { %1470 = vmatprep.subr.bf16.mxu0 %v2222_v17  ;;  %1593 = vmatprep.subr.bf16.mxu1 %v2228_v18 }
 0x1d1   :  { %2246 = vmatmul.mubr.msk.bf16.vlgmr.msra.gmra.mxu0 %vm921_vm4, %v2592_v51  ;;  %2249 = vmatmul.mubr.msk.bf16.vlgmr.msra.gmra.mxu1 %vm921_vm4, %v2592_v51 }
 0x1d2   :  { %1471 = vmatpush1.bf16.msra.mxu0 %v2221_v23  ;;  %1594 = vmatpush1.bf16.msra.mxu1 %v2227_v24 }
 0x1d3   :  { %1472 = vmatprep.subr.bf16.mxu0 %v2182_v25  ;;  %1595 = vmatprep.subr.bf16.mxu1 %v2188_v26 }
 0x1d4   :  { %1490 = vmatprep.mubr.bf16.mxu0 %v2472_v39  ;;  %1613 = vmatprep.mubr.bf16.mxu1 %v2472_v39 }
 0x1d6   :  { %1473 = vmatpush1.bf16.msra.mxu0 %v2181_v31  ;;  %1596 = vmatpush1.bf16.msra.mxu1 %v2187_v32 }
 0x1d7   :  { %1552 = vmatprep.subr.bf16.mxu0 %v2226_v33  ;;  %1675 = vmatprep.subr.bf16.mxu1 %v2232_v34 }
 0x1d9   :  { %2248 = vmatmul.mubr.msk.bf16.vlgmr.msra.gmra.mxu0 %vm921_vm4, %v2592_v51  ;;  %2251 = vmatmul.mubr.msk.bf16.vlgmr.msra.gmra.mxu1 %vm921_vm4, %v2592_v51 }
 0x1da   :  { %1553 = vmatpush1.bf16.msra.mxu0 %v2225_v40  ;;  %1676 = vmatpush1.bf16.msra.mxu1 %v2231_v41 }
 0x1db   :  { %1554 = vmatprep.subr.bf16.mxu0 %v2186_v42  ;;  %1677 = vmatprep.subr.bf16.mxu1 %v2192_v43 }
 0x1dc   :  { %1572 = vmatprep.mubr.bf16.mxu0 %v2472_v39  ;;  %1695 = vmatprep.mubr.bf16.mxu1 %v2472_v39 }
 0x1de   :  { %1555 = vmatpush1.bf16.msra.mxu0 %v2185_v46  ;;  %1678 = vmatpush1.bf16.msra.mxu1 %v2191_v47 }
 0x1df   :  { %1634 = vmatprep.subr.bf16.mxu0 %v2230_v48  ;;  %2300 = vmatprep.subr.mxu1 %v2470_v0 }
 0x1e1   :  { %2250 = vmatmul.mubr.msk.bf16.vlgmr.msra.gmra.mxu0 %vm921_vm4, %v2592_v51  ;;  %2253 = vmatmul.mubr.msk.bf16.vlgmr.msra.gmra.mxu1 %vm921_vm4, %v2592_v51 }
 0x1e2   :  { %1635 = vmatpush1.bf16.msra.mxu0 %v2229_v53  ;;  %2301 = vmatpush3.msra.mxu1 %v2031_v54 }
 0x1e3   :  { %2302 = vmatprep.subr.mxu1 %v2470_v0  ;;  %1636 = vmatprep.subr.bf16.mxu0 %v2190_v55 }
 0x1e4   :  { %2303 = vmatpush3.msra.mxu1 %v2030_v58  ;;  %1654 = vmatprep.mubr.bf16.mxu0 %v2472_v39  ;;  %v2729_v58 = vsub.s32 1, %v322_v49 }
 0x1e5   :  { %2304 = vmatprep.subr.mxu1 %v2470_v0  ;;  %2308 = vmatprep.mubr.msk.f32.mxu1 %vm2471_vm0, %v2470_v0 }
 0x1e6   :  { %1637 = vmatpush1.bf16.msra.mxu0 %v2189_v59  ;;  %2305 = vmatpush3.msra.mxu1 %v2029_v60  ;;  %v2731_v59 = vsub.s32 5, %v322_v49  ;;  %v2736_v60 = vld [vmem:[%s3387_s6] sm:$0xff] }
 0x1e7   :  { %2306 = vmatprep.subr.mxu1 %v2470_v0  ;;  %1716 = vmatprep.subr.bf16.mxu0 %v2234_v61  ;;  %v2738_v61 = vsub.s32 2, %v322_v49 }
 0x1e8   :  { %2307 = vmatpush3.msra.mxu1 %v2028_v1 }
 0x1e9   :  { %2252 = vmatmul.mubr.msk.bf16.vlgmr.msra.gmra.mxu0 %vm921_vm4, %v2592_v51  ;;  %2309 = vmatmul.mubr.msk.f32.vlgmr.msra.gmra.mxu1 %vm921_vm4, %v2588_v50 }
 0x1ea   :  { %1717 = vmatpush1.bf16.msra.mxu0 %v2233_v2  ;;  %1736 = vmatprep.mubr.bf16.mxu0 %v2472_v39  ;;  %v2749_v2 = vld [vmem:[%s3387_s6 + $0x8] sm:$0xff] }
 0x1eb   :  { %1718 = vmatprep.subr.bf16.mxu0 %v2194_v3  ;;  %v2751_v3 = vsub.s32 6, %v322_v49 }
 0x1ee   :  { %1719 = vmatpush1.bf16.msra.mxu0 %v2193_v4  ;;  %v2753_v4 = vsub.s32 7, %v322_v49 }
 0x1f1   :  { %2254 = vmatmul.mubr.msk.bf16.vlgmr.msra.gmra.mxu0 %vm921_vm4, %v2592_v51 }
 0x261   :  { %v2672_v5 = vpop.f32.mrf.mxu0  ;;  %v2674_v0 = vpop.f32.mrf.mxu1 }
 0x263   :  { %v2676_v6 = vpop.f32.mrf.mxu0  ;;  %v2678_v7 = vpop.f32.mrf.mxu1 }
 0x265   :  { %v963_v8 = vpop.f32.mrf.mxu0  ;;  %v1045_v9 = vpop.f32.mrf.mxu1 }
 0x267   :  { %v964_v50 = vpop.f32.mrf.mxu0  ;;  %v1046_v10 = vpop.f32.mrf.mxu1 }
 0x268   :  { %v324_v50 = vrot.slane %v2736_v60, %v2725_v56  ;;  %v340_v10 = vrot.slane %v2736_v60, %v2727_v57 }
 0x269   :  { %v2680_v11 = vpop.f32.mrf.mxu0  ;;  %v2682_v39 = vpop.f32.mrf.mxu1 }
 0x26b   :  { %v2684_v12 = vpop.f32.mrf.mxu0  ;;  %v2686_v13 = vpop.f32.mrf.mxu1 }
 0x26d   :  { %v1004_v51 = vpop.f32.mrf.mxu0  ;;  %v1127_v14 = vpop.f32.mrf.mxu1 }
 0x26e   :  { %v328_v51 = vrot.slane %v2736_v60, %v2729_v58  ;;  %v344_v14 = vrot.slane %v2736_v60, %v2731_v59 }
 0x26f   :  { %v1005_v15 = vpop.f32.mrf.mxu0  ;;  %v1128_v16 = vpop.f32.mrf.mxu1 }
 0x270   :  { %v2766_v15 = vld [vmem:[%s3387_s6 + $0x10] sm:$0xff]  ;;  %v332_v16 = vrot.slane %v2736_v60, %v2738_v61 }
 0x271   :  { %v2688_v17 = vpop.f32.mrf.mxu0  ;;  %v2690_v18 = vpop.f32.mrf.mxu1 }
 0x273   :  { %v2692_v19 = vpop.f32.mrf.mxu0  ;;  %v2694_v20 = vpop.f32.mrf.mxu1 }
 0x275   :  { %v1086_v21 = vpop.f32.mrf.mxu0  ;;  %v1209_v22 = vpop.f32.mrf.mxu1 }
 0x276   :  { %v356_v21 = vrot.slane %v2749_v2, %v2725_v56  ;;  %v336_v22 = vrot.slane %v2736_v60, %v2740_v62 }
 0x277   :  { %v1087_v23 = vpop.f32.mrf.mxu0  ;;  %v1210_v24 = vpop.f32.mrf.mxu1 }
 0x278   :  { %v360_v23 = vrot.slane %v2749_v2, %v2729_v58 }
 0x279   :  { %v2696_v25 = vpop.f32.mrf.mxu0  ;;  %v2698_v26 = vpop.f32.mrf.mxu1 }
 0x27b   :  { %v2700_v27 = vpop.f32.mrf.mxu0  ;;  %v2702_v28 = vpop.f32.mrf.mxu1 }
 0x27d   :  { %v1168_v29 = vpop.f32.mrf.mxu0  ;;  %v1291_v30 = vpop.f32.mrf.mxu1 }
 0x27e   :  { %v348_v30 = vrot.slane %v2736_v60, %v2751_v3 }
 0x27f   :  { %v1169_v31 = vpop.f32.mrf.mxu0  ;;  %v1292_v32 = vpop.f32.mrf.mxu1 }
 0x280   :  { %v372_v31 = vrot.slane %v2749_v2, %v2727_v57  ;;  %v352_v32 = vrot.slane %v2736_v60, %v2753_v4  ;;  %v400_v60 = vrot.slane %v2766_v15, %v2740_v62 }
 0x281   :  { %v2704_v33 = vpop.f32.mrf.mxu0  ;;  %v2706_v34 = vpop.f32.mrf.mxu1 }
 0x283   :  { %v2708_v35 = vpop.f32.mrf.mxu0  ;;  %v2710_v36 = vpop.f32.mrf.mxu1 }
 0x285   :  { %v1250_v37 = vpop.f32.mrf.mxu0  ;;  %v1373_v38 = vpop.f32.mrf.mxu1 }
 0x286   :  { %v376_v37 = vrot.slane %v2749_v2, %v2731_v59  ;;  %v2787_v38 = vld [vmem:[%s3387_s6 + $0x18] sm:$0xff] }
 0x287   :  { %v1251_v40 = vpop.f32.mrf.mxu0  ;;  %v1374_v41 = vpop.f32.mrf.mxu1 }
 0x288   :  { %v364_v40 = vrot.slane %v2749_v2, %v2738_v61  ;;  %v3403_v41 = vlaneseq }
 0x289   :  { %v2712_v42 = vpop.f32.mrf.mxu0  ;;  %v2714_v43 = vpop.f32.mrf.mxu1 }
 0x28a   :  { %3394 = vst [vmem:[#allocation11_spill] sm:$0xff] %v2714_v43  ;;  %v444_v43 = vrot.slane %v2787_v38, %v2751_v3 }
 0x28b   :  { %v2716_v45 = vpop.f32.mrf.mxu0  ;;  %v2718_v46 = vpop.f32.mrf.mxu1 }
 0x28d   :  { %v1332_v47 = vpop.f32.mrf.mxu0  ;;  %v1455_v48 = vpop.f32.mrf.mxu1 }
 0x28e   :  { %v368_v47 = vrot.slane %v2749_v2, %v2740_v62  ;;  %v392_v48 = vrot.slane %v2766_v15, %v2729_v58 }
 0x28f   :  { %v1333_v52 = vpop.f32.mrf.mxu0  ;;  %v1456_v53 = vpop.f32.mrf.mxu1 }
 0x290   :  { %v380_v53 = vrot.slane %v2749_v2, %v2751_v3 }
 0x291   :  { %v2721_v54 = vpop.f32.mrf.mxu0  ;;  %v2723_v55 = vpop.f32.mrf.mxu1 }
 0x292   :  { %3395 = vst [vmem:[#allocation12_spill] sm:$0xff] %v2721_v54  ;;  %3396 = vst [vmem:[#allocation13_spill] sm:$0xff] %v2723_v55  ;;  %v2851_v54 = vand.u32 127, %v3403_v41 }
 0x293   :  { %v2742_v63 = vpop.f32.mrf.mxu0  ;;  %v2744_v1 = vpop.f32.mrf.mxu1 }
 0x294   :  { %3397 = vst [vmem:[#allocation14_spill] sm:$0xff] %v2742_v63  ;;  %3398 = vst [vmem:[#allocation15_spill] sm:$0xff] %v2744_v1  ;;  %v2843_v63 = vadd.f32 %v2676_v6, %v328_v51  ;;  %v2846_v1 = vadd.f32 %v2678_v7, %v344_v14  ;;  %v2864_v51 = vadd.f32 %v2686_v13, %v360_v23  ;;  %vm2114_vm5 = vcmp.ge.s32.totalorder %v2851_v54, 9 }
 0x295   :  { %v1414_v8 = vpop.f32.mrf.mxu0  ;;  %v1537_v9 = vpop.f32.mrf.mxu1  ;;  %v2867_v14 = vadd.f32 %v2688_v17, %v348_v30  ;;  %v2890_v30 = vadd.f32 %v2680_v11, %v332_v16  ;;  %v2908_v11 = vadd.f32 %v2700_v27, %v368_v47  ;;  %v2917_v17 = vadd.f32 %v2704_v33, %v380_v53 }
 0x296   :  { %v384_v8 = vrot.slane %v2749_v2, %v2753_v4  ;;  %v408_v9 = vrot.slane %v2766_v15, %v2731_v59  ;;  %v2854_v2 = vadd.f32 %v2672_v5, %v324_v50  ;;  %v2874_v50 = vadd.f32 %v2682_v39, %v356_v21 }
 0x297   :  { %v1415_v24 = vpop.f32.mrf.mxu0  ;;  %v1538_v29 = vpop.f32.mrf.mxu1  ;;  %v1746_v23 = vmax.f32 %v2843_v63, %v2846_v1  ;;  %v2893_v39 = vadd.f32 %v2694_v20, %v376_v37  ;;  %v3404_v27 = vrot.slane %v2766_v15, %v2725_v56  ;;  %vm2115_vm6 = vcmp.lt.s32.totalorder %v2851_v54, 18 }
 0x298   :  { %v2812_v24 = vld [vmem:[%s3387_s6 + $0x20] sm:$0xff]  ;;  %v396_v29 = vrot.slane %v2766_v15, %v2738_v61  ;;  %v2934_v53 = vadd.f32 %v2710_v36, %v408_v9  ;;  %v3405_v9 = vrot.slane %v2766_v15, %v2727_v57  ;;  %v3418_v13 = vrot.slane %v2787_v38, %v2740_v62  ;;  %vm3025_vm7 = vmand %vm2114_vm5, %vm2115_vm6 }
 0x299   :  { %v2797_v49 = vpop.f32.mrf.mxu0  ;;  %v2799_v52 = vpop.f32.mrf.mxu1  ;;  %v456_v55 = vrot.slane %v2812_v24, %v2729_v58  ;;  %v1750_v37 = vmax.f32 %v1746_v23, %v2864_v51 }
 0x29a   :  { %3399 = vst [vmem:[#allocation16_spill] sm:$0xff] %v2797_v49  ;;  %3400 = vst [vmem:[#allocation17_spill] sm:$0xff] %v2799_v52  ;;  %v2937_v23 = vadd.f32 %v2712_v42, %v396_v29  ;;  %v2954_v29 = vadd.f32 %v2706_v34, %v3405_v9  ;;  %v3410_v34 = vrot.slane %v2766_v15, %v2753_v4  ;;  %v3413_v9 = vld [vmem:[#allocation11_spill] sm:$0xff] }
 0x29b   :  { %v2822_v44 = vpop.f32.mrf.mxu0  ;;  %v2824_v52 = vpop.f32.mrf.mxu1 }
 0x29c   :  { %3401 = vst [vmem:[#allocation18_spill] sm:$0xff] %v2822_v44  ;;  %3402 = vst [vmem:[#allocation19_spill] sm:$0xff] %v2824_v52  ;;  %v2857_v52 = vadd.f32 %v2674_v0, %v340_v10  ;;  %v2877_v10 = vadd.f32 %v2692_v19, %v352_v32  ;;  %v2896_v19 = vadd.f32 %v2696_v25, %v364_v40 }
 0x29d   :  { %v1496_v44 = vpop.f32.mrf.mxu0  ;;  %v1619_v49 = vpop.f32.mrf.mxu1  ;;  %v2902_v32 = vadd.f32 %v2684_v12, %v336_v22  ;;  %v1747_v25 = vmax.f32 %v2890_v30, %v2867_v14  ;;  %v2914_v40 = vadd.f32 %v2702_v28, %v392_v48  ;;  %v2926_v22 = vadd.f32 %v2698_v26, %v3404_v27 }
 0x29e   :  { %v1745_v21 = vmax.f32 %v2854_v2, %v2857_v52  ;;  %v1754_v48 = vmax.f32 %v1750_v37, %v2893_v39  ;;  %v2942_v27 = vadd.f32 %v2716_v45, %v400_v60  ;;  %v2255_v37 = vld [vmem:[%s3389_s8] ss:$0 sm:$0xff]  ;;  %v3406_v45 = vrot.slane %v2787_v38, %v2729_v58  ;;  %s2473_s8 = smov [#allocation6]  }
 0x29f   :  { %v1497_v44 = vpop.f32.mrf.mxu0  ;;  %v1620_v49 = vpop.f32.mrf.mxu1  ;;  %v1751_v33 = vmax.f32 %v1747_v25, %v2896_v19  ;;  %s2137_s15 = sshll.u32 %s2473_s8, 4  ;;  %s2138_s15 = int_to_ptr.vmem [resolvable:$true] %s2137_s15 }
 0x2a0   :  { %v2905_v49 = vadd.f32 %v2690_v18, %v372_v31  ;;  %v1749_v12 = vmax.f32 %v1745_v21, %v2874_v50  ;;  %v1748_v18 = vmax.f32 %v2902_v32, %v2877_v10  ;;  %v2929_v31 = vadd.f32 %v2708_v35, %v384_v8  ;;  %s2421_s16 = scalar_lea.vmem %s2138_s15, 128  ;;  %p2426_p6 = scmp.lt.s32.totalorder %s2138_s15, %s2138_s15 }
 0x2a1   :  { %v2879_v41 = vpop.f32.mrf.mxu0  ;;  %v2881_v44 = vpop.f32.mrf.mxu1  ;;  %v1758_v36 = vmax.f32 %v1754_v48, %v2914_v40  ;;  %v1755_v42 = vmax.f32 %v1751_v33, %v2917_v17  ;;  %v2960_v60 = vadd.f32 %v2718_v46, %v3406_v45  ;;  %v3411_v48 = vld [vmem:[#allocation14_spill] sm:$0xff]  ;;  %v3417_v6 = vld [vmem:[#allocation16_spill] sm:$0xff]  ;;  %p2422_p5 = scmp.ne.s32.totalorder %s2138_s15, %s2421_s16  ;;  %p2427_p7 = scmp.lt.s32.totalorder %s2421_s16, %s2421_s16 }
 0x2a2   :  { %v1753_v21 = vmax.f32 %v1749_v12, %v2905_v49  ;;  %v1752_v26 = vmax.f32 %v1748_v18, %v2908_v11  ;;  %v3408_v18 = vrot.slane %v2766_v15, %v2751_v3  ;;  %v2974_v33 = vadd.f32 %v3411_v48, %v3410_v34  ;;  %v3415_v34 = vld [vmem:[#allocation15_spill] sm:$0xff] }
 0x2a3   :  { %v1576_v16 = vpop.f32.mrf.mxu0  ;;  %v1699_v20 = vpop.f32.mrf.mxu1  ;;  %3407 = vst [vmem:[#allocation20_spill] sm:$0xff] %v2960_v60  ;;  %v1762_v46 = vmax.f32 %v1758_v36, %v2934_v53  ;;  %v3414_v15 = vrot.slane %v2787_v38, %v2731_v59  ;;  %v3416_v36 = vrot.slane %v2787_v38, %v2738_v61  ;;  %p2428_p8 = por %p2427_p7, %p2426_p6 }
 0x2a4   :  { %v1757_v25 = vmax.f32 %v1753_v21, %v2926_v22  ;;  %v1756_v12 = vmax.f32 %v1752_v26, %v2929_v31  ;;  %v1759_v21 = vmax.f32 %v1755_v42, %v2937_v23  ;;  %v3412_v26 = vrot.slane %v2787_v38, %v2725_v56 }
 0x2a5   :  { %v1578_v47 = vpop.f32.mrf.mxu0  ;;  %v1701_v28 = vpop.f32.mrf.mxu1  ;;  %v2989_v48 = vadd.f32 %v3415_v34, %v3414_v15  ;;  %v2995_v42 = vadd.f32 %v3417_v6, %v3416_v36  ;;  %v1766_v0 = vmax.f32 %v1762_v46, %v2960_v60  ;;  %v480_v34 = vrot.slane %v2812_v24, %v2753_v4  ;;  %v3421_v36 = vld [vmem:[#allocation13_spill] sm:$0xff]  ;;  %p2429_p9 = pnand %p2428_p8, %p2422_p5 }
 0x2a6   :  { %v3409_v47 = vld [vmem:[#allocation12_spill] sm:$0xff]  ;;  %v2982_v45 = vadd.f32 %v3413_v9, %v3412_v26  ;;  %v3419_v26 = vld [vmem:[#allocation18_spill] sm:$0xff]  ;;  %v3420_v6 = vrot.slane %v2787_v38, %v2727_v57 }
 0x2a7   :  { %v1579_v35 = vpop.f32.mrf.mxu0  ;;  %v1702_v8 = vpop.f32.mrf.mxu1  ;;  %v2968_v28 = vadd.f32 %v3409_v47, %v3408_v18  ;;  %v1760_v47 = vmax.f32 %v1756_v12, %v2942_v27  ;;  %v3001_v9 = vadd.f32 %v3419_v26, %v3418_v13  ;;  %v1770_v54 = vmax.f32 %v1766_v0, %v2989_v48 }
 0x2a8   :  { %v3012_v7 = vadd.f32 %v3421_v36, %v3420_v6 }
 0x2a9   :  { %v1656_v35 = vpop.f32.mrf.mxu0  ;;  %v2108_v8 = vpop.f32.mrf.mxu1  ;;  %v1763_v5 = vmax.f32 %v1759_v21, %v2968_v28  ;;  %v1764_v13 = vmax.f32 %v1760_v47, %v2974_v33  ;;  %v3034_v47 = vadd.f32 %v2879_v41, %v444_v43  ;;  %v3428_v41 = vrot.slane %v2812_v24, %v2731_v59 }
 0x2aa   :  { %v2109_v18 = vadd.f32 %v2255_v37, %v2108_v8  ;;  %v1761_v8 = vmax.f32 %v1757_v25, %v2954_v29  ;;  %v3422_v25 = vld [vmem:[#allocation19_spill] sm:$0xff] }
 0x2ab   :  { %v1658_v37 = vpop.f32.mrf.mxu0  ;;  %v2310_v12 = vpop.f32.mrf.mxu1  ;;  %v3019_v26 = vadd.f32 %v3422_v25, %v456_v55  ;;  %v3425_v55 = vrot.slane %v2787_v38, %v2753_v4  ;;  %v1767_v36 = vmax.f32 %v1763_v5, %v2995_v42  ;;  %v3426_v25 = vrot.slane %v2812_v24, %v2725_v56 }
 0x2ac   :  { %v2117_v15 = vmax.f32 %v2109_v18, -20.0  ;;  %v1765_v12 = vmax.f32 %v1761_v8, %v2982_v45  ;;  %v3427_v8 = vld [vmem:[#allocation17_spill] sm:$0xff]  ;;  %v1768_v60 = vmax.f32 %v1764_v13, %v3001_v9  ;;  %v3053_v4 = vadd.f32 %v1699_v20, %v3428_v41 }
 0x2ad   :  { %v1660_v46 = vpop.f32.mrf.mxu0  ;;  %v3039_v58 = vadd.f32 %v1576_v16, %v3425_v55  ;;  %v3429_v38 = vrot.slane %v2812_v24, %v2738_v61  ;;  %v3430_v5 = vrot.slane %v2812_v24, %v2740_v62  ;;  %v1774_v13 = vmax.f32 %v1770_v54, %v3019_v26 }
 0x2ae   :  { %v2118_v6 = vmin.f32 %v2117_v15, 2.0  ;;  %v3047_v46 = vadd.f32 %v3427_v8, %v3426_v25  ;;  %v1769_v15 = vmax.f32 %v1765_v12, %v3012_v7  ;;  %v1771_v20 = vmax.f32 %v1767_v36, %v3034_v47 }
 0x2af   :  { %v1661_v43 = vpop.f32.mrf.mxu0  ;;  %v3058_v0 = vadd.f32 %v1656_v35, %v3429_v38  ;;  %v3063_v56 = vadd.f32 %v1658_v37, %v3430_v5  ;;  %v3431_v61 = vrot.slane %v2812_v24, %v2727_v57  ;;  %v1772_v62 = vmax.f32 %v1768_v60, %v3039_v58 }
 0x2b0   :  { %v2119_v16 = vsel %vm3025_vm7, %v2118_v6, %v2109_v18  ;;  %v3432_v37 = vrot.slane %v2812_v24, %v2751_v3  ;;  %v1773_v21 = vmax.f32 %v1769_v15, %v3047_v46  ;;  %v1778_v55 = vmax.f32 %v1774_v13, %v3053_v4 }
 0x2b1   :  { %v1738_v59 = vpop.f32.mrf.mxu0  ;;  %2120 = vst [vmem:[#allocation6] sm:$0xff] %v2119_v16  ;;  %v3074_v35 = vadd.f32 %v2881_v44, %v3431_v61  ;;  %v1775_v6 = vmax.f32 %v1771_v20, %v3058_v0  ;;  %v1776_v54 = vmax.f32 %v1772_v62, %v3063_v56 }
 0x2b2   :  { %v3080_v18 = vadd.f32 %v1738_v59, %v3432_v37 }
 0x2b3   :  { %v1740_v12 = vpop.f32.mrf.mxu0  ;;  %v1777_v36 = vmax.f32 %v1773_v21, %v3074_v35 }
 0x2b4   :  { %v3086_v57 = vadd.f32 %v1740_v12, %v480_v34  ;;  %v1779_v60 = vmax.f32 %v1775_v6, %v3080_v18 }
 0x2b5   :  { %v1742_v44 = vpop.f32.mrf.mxu0  ;;  %v1781_v25 = vmax.f32 %v1777_v36, %v1778_v55 }
 0x2b6   :  { %v1780_v3 = vmax.f32 %v1776_v54, %v3086_v57 }
 0x2b7   :  { %v1743_v24 = vpop.f32.mrf.mxu0 }
 0x2b8   :  { %v1782_v8 = vmax.f32 %v1779_v60, %v1780_v3 }
 0x2ba   :  { %v1783_v43 = vmax.f32 %v1781_v25, %v1782_v8 }
 0x2bc   :  { %1784 = vmax.xlane.f32.xlu0 %v1783_v43 }
 0x345   :  { %v3091_v41 = vpop.xlane.xlu0 %1784 }
 0x346   :  { %v1786_v38 = vsub.f32 %v2854_v2, %v3091_v41  ;;  %v1787_v34 = vsub.f32 %v2843_v63, %v3091_v41  ;;  %v1788_v5 = vsub.f32 %v2890_v30, %v3091_v41  ;;  %v1789_v16 = vsub.f32 %v2902_v32, %v3091_v41 }
 0x347   :  { %v1790_v59 = vsub.f32 %v2857_v52, %v3091_v41  ;;  %v1791_v61 = vsub.f32 %v2846_v1, %v3091_v41  ;;  %v1792_v63 = vsub.f32 %v2867_v14, %v3091_v41  ;;  %v1793_v32 = vsub.f32 %v2877_v10, %v3091_v41 }
 0x348   :  { %v1826_v15 = vmul.f32 1.442695, %v1786_v38  ;;  %v1828_v13 = vmul.f32 1.442695, %v1787_v34  ;;  %v1830_v20 = vmul.f32 1.442695, %v1788_v5  ;;  %v1794_v52 = vsub.f32 %v2874_v50, %v3091_v41 }
 0x349   :  { %v1832_v2 = vmul.f32 1.442695, %v1789_v16  ;;  %v1834_v30 = vmul.f32 1.442695, %v1790_v59  ;;  %v1836_v62 = vmul.f32 1.442695, %v1791_v61  ;;  %v1795_v1 = vsub.f32 %v2864_v51, %v3091_v41 }
 0x34a   :  { %2319 = vpow2.f32 %v1826_v15  ;;  %v1838_v37 = vmul.f32 1.442695, %v1792_v63  ;;  %v1840_v21 = vmul.f32 1.442695, %v1793_v32  ;;  %v1796_v14 = vsub.f32 %v2896_v19, %v3091_v41 }
 0x34b   :  { %2321 = vpow2.f32 %v1828_v13  ;;  %v1842_v12 = vmul.f32 1.442695, %v1794_v52  ;;  %v1797_v10 = vsub.f32 %v2908_v11, %v3091_v41  ;;  %v1844_v6 = vmul.f32 1.442695, %v1795_v1 }
 0x34c   :  { %2323 = vpow2.f32 %v1830_v20  ;;  %v1798_v54 = vsub.f32 %v2905_v49, %v3091_v41  ;;  %v1846_v51 = vmul.f32 1.442695, %v1796_v14  ;;  %v1799_v36 = vsub.f32 %v2893_v39, %v3091_v41 }
 0x34d   :  { %2325 = vpow2.f32 %v1832_v2  ;;  %v1848_v60 = vmul.f32 1.442695, %v1797_v10  ;;  %v1800_v24 = vsub.f32 %v2917_v17, %v3091_v41  ;;  %v1801_v43 = vsub.f32 %v2929_v31, %v3091_v41 }
 0x34e   :  { %2327 = vpow2.f32 %v1834_v30  ;;  %v1850_v49 = vmul.f32 1.442695, %v1798_v54  ;;  %v1852_v39 = vmul.f32 1.442695, %v1799_v36  ;;  %v1802_v5 = vsub.f32 %v2926_v22, %v3091_v41 }
 0x34f   :  { %2329 = vpow2.f32 %v1836_v62  ;;  %v1854_v17 = vmul.f32 1.442695, %v1800_v24  ;;  %v1803_v13 = vsub.f32 %v2914_v40, %v3091_v41  ;;  %v1856_v31 = vmul.f32 1.442695, %v1801_v43 }
 0x350   :  { %2331 = vpow2.f32 %v1838_v37  ;;  %v1804_v61 = vsub.f32 %v2937_v23, %v3091_v41  ;;  %v1858_v22 = vmul.f32 1.442695, %v1802_v5  ;;  %v1805_v30 = vsub.f32 %v2942_v27, %v3091_v41 }
 0x351   :  { %2333 = vpow2.f32 %v1840_v21  ;;  %v1860_v40 = vmul.f32 1.442695, %v1803_v13  ;;  %v1806_v52 = vsub.f32 %v2954_v29, %v3091_v41  ;;  %v1807_v21 = vsub.f32 %v2934_v53, %v3091_v41 }
 0x352   :  { %2335 = vpow2.f32 %v1842_v12  ;;  %v1862_v23 = vmul.f32 1.442695, %v1804_v61  ;;  %v1864_v27 = vmul.f32 1.442695, %v1805_v30  ;;  %v1808_v10 = vsub.f32 %v2968_v28, %v3091_v41 }
 0x353   :  { %2337 = vpow2.f32 %v1844_v6  ;;  %v1866_v29 = vmul.f32 1.442695, %v1806_v52  ;;  %v1868_v53 = vmul.f32 1.442695, %v1807_v21  ;;  %v1814_v61 = vsub.f32 %v3012_v7, %v3091_v41 }
 0x354   :  { %2339 = vpow2.f32 %v1846_v51  ;;  %v1809_v51 = vsub.f32 %v2974_v33, %v3091_v41  ;;  %v1870_v28 = vmul.f32 1.442695, %v1808_v10  ;;  %v1815_v30 = vsub.f32 %v2989_v48, %v3091_v41 }
 0x355   :  { %2341 = vpow2.f32 %v1848_v60  ;;  %v1810_v60 = vsub.f32 %v2982_v45, %v3091_v41  ;;  %v1816_v52 = vsub.f32 %v3034_v47, %v3091_v41  ;;  %v1882_v7 = vmul.f32 1.442695, %v1814_v61 }
 0x356   :  { %2343 = vpow2.f32 %v1850_v49  ;;  %v3433_v49 = vld [vmem:[#allocation20_spill] sm:$0xff]  ;;  %v1872_v33 = vmul.f32 1.442695, %v1809_v51  ;;  %v1817_v21 = vsub.f32 %v3039_v58, %v3091_v41  ;;  %v1884_v48 = vmul.f32 1.442695, %v1815_v30 }
 0x357   :  { %v3115_v55 = vpop.eup %2319  ;;  %2345 = vpow2.f32 %v1852_v39  ;;  %v1874_v45 = vmul.f32 1.442695, %v1810_v60  ;;  %v1818_v10 = vsub.f32 %v3047_v46, %v3091_v41  ;;  %v1886_v47 = vmul.f32 1.442695, %v1816_v52 }
 0x358   :  { %v3119_v50 = vpop.eup %2321  ;;  %2347 = vpow2.f32 %v1854_v17  ;;  %v1819_v51 = vsub.f32 %v3019_v26, %v3091_v41  ;;  %v1888_v58 = vmul.f32 1.442695, %v1817_v21  ;;  %v1820_v60 = vsub.f32 %v3058_v0, %v3091_v41 }
 0x359   :  { %v1906_v44 = vadd.f32 %v3119_v50, %v3115_v55  ;;  %v3125_v19 = vpop.eup %2323  ;;  %2349 = vpow2.f32 %v1856_v31  ;;  %v1890_v46 = vmul.f32 1.442695, %v1818_v10 }
 0x35a   :  { %v3130_v3 = vpop.eup %2325  ;;  %2351 = vpow2.f32 %v1858_v22  ;;  %v1892_v26 = vmul.f32 1.442695, %v1819_v51  ;;  %v1894_v0 = vmul.f32 1.442695, %v1820_v60 }
 0x35b   :  { %v1907_v11 = vadd.f32 %v3125_v19, %v1906_v44  ;;  %v3135_v8 = vpop.eup %2327  ;;  %2353 = vpow2.f32 %v1860_v40 }
 0x35c   :  { %v3140_v34 = vpop.eup %2329  ;;  %2355 = vpow2.f32 %v1862_v23 }
 0x35d   :  { %v1908_v25 = vadd.f32 %v3130_v3, %v1907_v11  ;;  %v3145_v15 = vpop.eup %2331  ;;  %2357 = vpow2.f32 %v1864_v27 }
 0x35e   :  { %v3150_v20 = vpop.eup %2333  ;;  %2359 = vpow2.f32 %v1866_v29 }
 0x35f   :  { %v1909_v38 = vadd.f32 %v3135_v8, %v1908_v25  ;;  %v3155_v63 = vpop.eup %2335  ;;  %v1811_v25 = vsub.f32 %v3433_v49, %v3091_v41  ;;  %2361 = vpow2.f32 %v1868_v53  ;;  %v1821_v49 = vsub.f32 %v3063_v56, %v3091_v41 }
 0x360   :  { %v3160_v62 = vpop.eup %2337  ;;  %2363 = vpow2.f32 %v1870_v28 }
 0x361   :  { %v1910_v16 = vadd.f32 %v3140_v34, %v1909_v38  ;;  %v3165_v1 = vpop.eup %2339  ;;  %v1812_v38 = vsub.f32 %v2995_v42, %v3091_v41  ;;  %2365 = vpow2.f32 %v1872_v33  ;;  %v1876_v13 = vmul.f32 1.442695, %v1811_v25 }
 0x362   :  { %v3170_v12 = vpop.eup %2341  ;;  %2367 = vpow2.f32 %v1874_v45  ;;  %v1896_v56 = vmul.f32 1.442695, %v1821_v49 }
 0x363   :  { %v1911_v59 = vadd.f32 %v3145_v15, %v1910_v16  ;;  %v3175_v54 = vpop.eup %2343  ;;  %v1813_v16 = vsub.f32 %v3001_v9, %v3091_v41  ;;  %v1878_v42 = vmul.f32 1.442695, %v1812_v38  ;;  %2369 = vpow2.f32 %v1876_v13 }
 0x364   :  { %v3180_v36 = vpop.eup %2345 }
 0x365   :  { %v1912_v2 = vadd.f32 %v3150_v20, %v1911_v59  ;;  %v3185_v24 = vpop.eup %2347  ;;  %v1880_v9 = vmul.f32 1.442695, %v1813_v16  ;;  %2371 = vpow2.f32 %v1878_v42 }
 0x366   :  { %v3190_v39 = vpop.eup %2349 }
 0x367   :  { %v1913_v32 = vadd.f32 %v3155_v63, %v1912_v2  ;;  %v3195_v17 = vpop.eup %2351  ;;  %2373 = vpow2.f32 %v1880_v9 }
 0x368   :  { %v3200_v59 = vpop.eup %2353  ;;  %2375 = vpow2.f32 %v1882_v7 }
 0x369   :  { %v1914_v37 = vadd.f32 %v3160_v62, %v1913_v32  ;;  %v3205_v2 = vpop.eup %2355  ;;  %2377 = vpow2.f32 %v1884_v48 }
 0x36a   :  { %v3210_v32 = vpop.eup %2357  ;;  %2379 = vpow2.f32 %v1886_v47 }
 0x36b   :  { %v1915_v14 = vadd.f32 %v3165_v1, %v1914_v37  ;;  %v3215_v37 = vpop.eup %2359  ;;  %2381 = vpow2.f32 %v1888_v58 }
 0x36c   :  { %2383 = vpow2.f32 %v1890_v46 }
 0x36d   :  { %v1916_v6 = vadd.f32 %v3170_v12, %v1915_v14  ;;  %v3220_v14 = vpop.eup %2361  ;;  %2385 = vpow2.f32 %v1892_v26 }
 0x36e   :  { %2387 = vpow2.f32 %v1894_v0 }
 0x36f   :  { %v1917_v44 = vadd.f32 %v3175_v54, %v1916_v6  ;;  %v3225_v6 = vpop.eup %2363  ;;  %2389 = vpow2.f32 %v1896_v56 }
 0x371   :  { %v1918_v11 = vadd.f32 %v3180_v36, %v1917_v44  ;;  %v3230_v44 = vpop.eup %2365 }
 0x373   :  { %v1919_v43 = vadd.f32 %v3185_v24, %v1918_v11  ;;  %v3235_v11 = vpop.eup %2367 }
 0x374   :  { %v3240_v33 = vpop.eup %2369 }
 0x375   :  { %v1920_v5 = vadd.f32 %v3190_v39, %v1919_v43  ;;  %v1822_v43 = vsub.f32 %v3074_v35, %v3091_v41  ;;  %v3245_v45 = vpop.eup %2371 }
 0x376   :  { %v3250_v13 = vpop.eup %2373 }
 0x377   :  { %v1921_v31 = vadd.f32 %v3195_v17, %v1920_v5  ;;  %v1823_v5 = vsub.f32 %v3053_v4, %v3091_v41  ;;  %v1898_v35 = vmul.f32 1.442695, %v1822_v43  ;;  %v3255_v42 = vpop.eup %2375 }
 0x378   :  { %v3260_v9 = vpop.eup %2377 }
 0x379   :  { %v1922_v22 = vadd.f32 %v3200_v59, %v1921_v31  ;;  %v1824_v31 = vsub.f32 %v3080_v18, %v3091_v41  ;;  %v1900_v4 = vmul.f32 1.442695, %v1823_v5  ;;  %2391 = vpow2.f32 %v1898_v35  ;;  %v3263_v18 = vpop.eup %2379 }
 0x37a   :  { %v3266_v21 = vpop.eup %2381 }
 0x37b   :  { %v1923_v40 = vadd.f32 %v3205_v2, %v1922_v22  ;;  %v1825_v22 = vsub.f32 %v3086_v57, %v3091_v41  ;;  %2393 = vpow2.f32 %v1900_v4  ;;  %v3269_v41 = vpop.eup %2383 }
 0x37d   :  { %v1924_v23 = vadd.f32 %v3210_v32, %v1923_v40  ;;  %v1902_v40 = vmul.f32 1.442695, %v1824_v31  ;;  %v1904_v7 = vmul.f32 1.442695, %v1825_v22 }
 0x37f   :  { %v1925_v27 = vadd.f32 %v3215_v37, %v1924_v23  ;;  %2395 = vpow2.f32 %v1902_v40 }
 0x380   :  { %2397 = vpow2.f32 %v1904_v7 }
 0x381   :  { %v1926_v29 = vadd.f32 %v3220_v14, %v1925_v27  ;;  %v3272_v27 = vpop.eup %2385 }
 0x382   :  { %v3275_v47 = vpop.eup %2387 }
 0x383   :  { %v1927_v53 = vadd.f32 %v3225_v6, %v1926_v29  ;;  %v3278_v51 = vpop.eup %2389 }
 0x385   :  { %v1928_v28 = vadd.f32 %v3230_v44, %v1927_v53 }
 0x386   :  { %v3281_v53 = vpop.eup %2391 }
 0x387   :  { %v1929_v25 = vadd.f32 %v3235_v11, %v1928_v28 }
 0x388   :  { %v3284_v46 = vpop.eup %2393 }
 0x389   :  { %v1930_v38 = vadd.f32 %v3240_v33, %v1929_v25 }
 0x38b   :  { %v1931_v16 = vadd.f32 %v3245_v45, %v1930_v38 }
 0x38c   :  { %v3287_v49 = vpop.eup %2395 }
 0x38d   :  { %v1932_v61 = vadd.f32 %v3250_v13, %v1931_v16  ;;  %v3290_v25 = vpop.eup %2397 }
 0x38f   :  { %v1933_v30 = vadd.f32 %v3255_v42, %v1932_v61 }
 0x391   :  { %v1934_v52 = vadd.f32 %v3260_v9, %v1933_v30 }
 0x393   :  { %v1935_v23 = vadd.f32 %v3263_v18, %v1934_v52 }
 0x395   :  { %v1936_v57 = vadd.f32 %v3266_v21, %v1935_v23 }
 0x397   :  { %v1937_v48 = vadd.f32 %v3269_v41, %v1936_v57 }
 0x399   :  { %v1938_v10 = vadd.f32 %v3272_v27, %v1937_v48 }
 0x39b   :  { %v1939_v29 = vadd.f32 %v3275_v47, %v1938_v10 }
 0x39d   :  { %v1940_v58 = vadd.f32 %v3278_v51, %v1939_v29 }
 0x39f   :  { %v1941_v60 = vadd.f32 %v3281_v53, %v1940_v58 }
 0x3a1   :  { %v1942_v28 = vadd.f32 %v3284_v46, %v1941_v60 }
 0x3a3   :  { %v1943_v26 = vadd.f32 %v3287_v49, %v1942_v28 }
 0x3a5   :  { %v1944_v43 = vadd.f32 %v3290_v25, %v1943_v26 }
 0x3a7   :  { %1945 = vadd.xlane.f32.xlu0 %v1944_v43 }
 0x3a8   :  { %2432 = shalt.err (!%p2429_p9)
}
 0x3a9   :  { %2140 = dma.vmem_to_hbm [thread:$0]  %s2138_s15, 128, %s3391_s10, [#allocation7]  }
 0x3aa   :  { %s2474_s10 = smov [#allocation5]  }
 0x3ab   :  { %s2127_s19 = sshll.u32 %s2474_s10, 4  ;;  %s2128_s19 = int_to_ptr.vmem [resolvable:$true] %s2127_s19 }
 0x3ac   :  { %s2441_s20 = scalar_lea.vmem %s2128_s19, 5120  ;;  %p2446_p11 = scmp.lt.s32.totalorder %s2128_s19, %s2128_s19 }
 0x3ad   :  { %p2442_p10 = scmp.ne.s32.totalorder %s2128_s19, %s2441_s20  ;;  %p2447_p12 = scmp.lt.s32.totalorder %s2441_s20, %s2441_s20 }
 0x3af   :  { %p2448_p13 = por %p2447_p12, %p2446_p11 }
 0x3b1   :  { %p2449_p0 = pnand %p2448_p13, %p2442_p10 }
 0x430   :  { %v1946_v0 = vpop.xlane.xlu0 %1945 }
 0x431   :  { %2399 = vrcp.f32 %v1946_v0 }
 0x43e   :  { %v3296_v38 = vpop.eup %2399 }
 0x43f   :  { %v1948_v5 = vmul.f32 %v3296_v38, %v3115_v55  ;;  %v1949_v56 = vmul.f32 %v3296_v38, %v3119_v50  ;;  %v1950_v16 = vmul.f32 %v3296_v38, %v3125_v19  ;;  %v1951_v31 = vmul.f32 %v3296_v38, %v3130_v3 }
 0x440   :  { %v1952_v35 = vmul.f32 %v3296_v38, %v3135_v8  ;;  %v1953_v61 = vmul.f32 %v3296_v38, %v3140_v34  ;;  %v1954_v22 = vmul.f32 %v3296_v38, %v3145_v15  ;;  %v1955_v55 = vmul.f32 %v3296_v38, %v3150_v20 }
 0x441   :  { %v1956_v50 = vmul.f32 %v3296_v38, %v3155_v63  ;;  %v1957_v19 = vmul.f32 %v3296_v38, %v3160_v62  ;;  %v1958_v3 = vmul.f32 %v3296_v38, %v3165_v1  ;;  %v1959_v8 = vmul.f32 %v3296_v38, %v3170_v12  ;;  %1988 = vst [vmem:[#allocation5] sm:$0xff] %v1948_v5 }
 0x442   :  { %1989 = vst [vmem:[#allocation5 + $0x8] sm:$0xff] %v1949_v56  ;;  %1990 = vst [vmem:[#allocation5 + $0x10] sm:$0xff] %v1950_v16  ;;  %v1960_v34 = vmul.f32 %v3296_v38, %v3175_v54  ;;  %v1961_v15 = vmul.f32 %v3296_v38, %v3180_v36  ;;  %v1962_v20 = vmul.f32 %v3296_v38, %v3185_v24 }
 0x443   :  { %1991 = vst [vmem:[#allocation5 + $0x18] sm:$0xff] %v1951_v31  ;;  %v1963_v63 = vmul.f32 %v3296_v38, %v3190_v39  ;;  %1992 = vst [vmem:[#allocation5 + $0x20] sm:$0xff] %v1952_v35  ;;  %v1964_v62 = vmul.f32 %v3296_v38, %v3195_v17  ;;  %v1965_v1 = vmul.f32 %v3296_v38, %v3200_v59 }
 0x444   :  { %1993 = vst [vmem:[#allocation5 + $0x28] sm:$0xff] %v1953_v61  ;;  %1994 = vst [vmem:[#allocation5 + $0x30] sm:$0xff] %v1954_v22  ;;  %v1966_v12 = vmul.f32 %v3296_v38, %v3205_v2  ;;  %v1967_v54 = vmul.f32 %v3296_v38, %v3210_v32  ;;  %v1968_v36 = vmul.f32 %v3296_v38, %v3215_v37 }
 0x445   :  { %1995 = vst [vmem:[#allocation5 + $0x38] sm:$0xff] %v1955_v55  ;;  %1996 = vst [vmem:[#allocation5 + $0x40] sm:$0xff] %v1956_v50  ;;  %v1969_v24 = vmul.f32 %v3296_v38, %v3220_v14  ;;  %v1970_v39 = vmul.f32 %v3296_v38, %v3225_v6  ;;  %v1971_v17 = vmul.f32 %v3296_v38, %v3230_v44 }
 0x446   :  { %1997 = vst [vmem:[#allocation5 + $0x48] sm:$0xff] %v1957_v19  ;;  %1998 = vst [vmem:[#allocation5 + $0x50] sm:$0xff] %v1958_v3  ;;  %v1972_v59 = vmul.f32 %v3296_v38, %v3235_v11  ;;  %v1973_v2 = vmul.f32 %v3296_v38, %v3240_v33  ;;  %v1974_v32 = vmul.f32 %v3296_v38, %v3245_v45 }
 0x447   :  { %1999 = vst [vmem:[#allocation5 + $0x58] sm:$0xff] %v1959_v8  ;;  %2000 = vst [vmem:[#allocation5 + $0x60] sm:$0xff] %v1960_v34  ;;  %v1975_v37 = vmul.f32 %v3296_v38, %v3250_v13  ;;  %v1976_v14 = vmul.f32 %v3296_v38, %v3255_v42  ;;  %v1977_v6 = vmul.f32 %v3296_v38, %v3260_v9 }
 0x448   :  { %2001 = vst [vmem:[#allocation5 + $0x68] sm:$0xff] %v1961_v15  ;;  %2002 = vst [vmem:[#allocation5 + $0x70] sm:$0xff] %v1962_v20  ;;  %v1978_v44 = vmul.f32 %v3296_v38, %v3263_v18  ;;  %v1979_v11 = vmul.f32 %v3296_v38, %v3266_v21  ;;  %v1980_v33 = vmul.f32 %v3296_v38, %v3269_v41 }
 0x449   :  { %2003 = vst [vmem:[#allocation5 + $0x78] sm:$0xff] %v1963_v63  ;;  %2004 = vst [vmem:[#allocation5 + $0x80] sm:$0xff] %v1964_v62  ;;  %v1981_v45 = vmul.f32 %v3296_v38, %v3272_v27  ;;  %v1982_v13 = vmul.f32 %v3296_v38, %v3275_v47  ;;  %v1983_v42 = vmul.f32 %v3296_v38, %v3278_v51 }
 0x44a   :  { %2005 = vst [vmem:[#allocation5 + $0x88] sm:$0xff] %v1965_v1  ;;  %2006 = vst [vmem:[#allocation5 + $0x90] sm:$0xff] %v1966_v12  ;;  %v1984_v4 = vmul.f32 %v3296_v38, %v3281_v53  ;;  %v1985_v30 = vmul.f32 %v3296_v38, %v3284_v46  ;;  %v1986_v9 = vmul.f32 %v3296_v38, %v3287_v49 }
 0x44b   :  { %2007 = vst [vmem:[#allocation5 + $0x98] sm:$0xff] %v1967_v54  ;;  %2008 = vst [vmem:[#allocation5 + $0xa0] sm:$0xff] %v1968_v36  ;;  %v1987_v40 = vmul.f32 %v3296_v38, %v3290_v25 }
 0x44c   :  { %2009 = vst [vmem:[#allocation5 + $0xa8] sm:$0xff] %v1969_v24  ;;  %2010 = vst [vmem:[#allocation5 + $0xb0] sm:$0xff] %v1970_v39 }
 0x44d   :  { %2011 = vst [vmem:[#allocation5 + $0xb8] sm:$0xff] %v1971_v17  ;;  %2012 = vst [vmem:[#allocation5 + $0xc0] sm:$0xff] %v1972_v59 }
 0x44e   :  { %2013 = vst [vmem:[#allocation5 + $0xc8] sm:$0xff] %v1973_v2  ;;  %2014 = vst [vmem:[#allocation5 + $0xd0] sm:$0xff] %v1974_v32 }
 0x44f   :  { %2015 = vst [vmem:[#allocation5 + $0xd8] sm:$0xff] %v1975_v37  ;;  %2016 = vst [vmem:[#allocation5 + $0xe0] sm:$0xff] %v1976_v14 }
 0x450   :  { %2017 = vst [vmem:[#allocation5 + $0xe8] sm:$0xff] %v1977_v6  ;;  %2018 = vst [vmem:[#allocation5 + $0xf0] sm:$0xff] %v1978_v44 }
 0x451   :  { %2019 = vst [vmem:[#allocation5 + $0xf8] sm:$0xff] %v1979_v11  ;;  %2020 = vst [vmem:[#allocation5 + $0x100] sm:$0xff] %v1980_v33 }
 0x452   :  { %2021 = vst [vmem:[#allocation5 + $0x108] sm:$0xff] %v1981_v45  ;;  %2022 = vst [vmem:[#allocation5 + $0x110] sm:$0xff] %v1982_v13 }
 0x453   :  { %2023 = vst [vmem:[#allocation5 + $0x118] sm:$0xff] %v1983_v42  ;;  %2024 = vst [vmem:[#allocation5 + $0x120] sm:$0xff] %v1984_v4 }
 0x454   :  { %2025 = vst [vmem:[#allocation5 + $0x128] sm:$0xff] %v1985_v30  ;;  %2026 = vst [vmem:[#allocation5 + $0x130] sm:$0xff] %v1986_v9 }
 0x455   :  { %2027 = vst [vmem:[#allocation5 + $0x138] sm:$0xff] %v1987_v40 }
 0x456   :  { %2452 = shalt.err (!%p2449_p0)
}
 0x457   :  { %2130 = dma.vmem_to_hbm [thread:$0]  %s2128_s19, 5120, %s3390_s9, [#allocation4]  }
 0x458   :  { %2463 = dma.done.wait [#allocation4], 5120  }
 0x459   :  { %2464 = vsyncadd [#allocation4], 4294962176 }
 0x45a   :  { %2465 = dma.done.wait [#allocation7], 128  }
 0x45b   :  { %2466 = vsyncadd [#allocation7], 4294967168 }
 0x45c   :  { %2147 = vsyncpa [#allocation3], 1 }
 0x45d   :  { %2148 = vsyncpa [#allocation4], 1 }
 0x45e   :  { %2149 = vsyncpa [#allocation7], 1 }

</bundles_post_ra>
